<compile_context>
chip_gen: v5e
topology: v5e:2x2
jax: 0.10.0
libtpu: 0.0.40
codegen_flags: <defaults>
</compile_context>

<pallas_src>
import jax
import jax.numpy as jnp
from jax.experimental import pallas as pl
from jax.experimental.pallas import tpu as pltpu


def _round_up(n, m):
    return (n + m - 1) // m * m


def _choose_layers_per_step(num_layers, weight_tile_bytes):
    """Group layers per grid step to amortize per-step overhead, keeping the
    double-buffered grouped weight tile well under a few MiB of VMEM."""
    for lps in (4, 2, 1):
        if num_layers % lps == 0 and 2 * lps * weight_tile_bytes <= 8 * 1024 * 1024:
            return lps
    return 1


def _lstm_block_kernel(x_ref, h_ref, c_ref, w_ref, b_ref,
                       hn_ref, cn_ref, xh_ref):
    """Processes `lps` layers per grid step; xh_ref (bf16) carries x_cur."""
    step = pl.program_id(0)
    lps, B, H = h_ref.shape
    k_in = x_ref.shape[1]          # padded input width (multiple of 128)

    # First layer of the chain: load the (padded, bf16) external input.
    @pl.when(step == 0)
    def _():
        xh_ref[:, :k_in] = x_ref[...]

    for j in range(lps):           # static unroll within the grid step
        # Place this layer's h_prev next to x_cur -> fused operand [x_cur | h].
        xh_ref[:, k_in:] = h_ref[j].astype(xh_ref.dtype)

        # Single MXU matmul: (B, k_in+H) bf16 @ (k_in+H, 4H) bf16, f32 accum.
        gates = jnp.dot(xh_ref[...], w_ref[j],
                        preferred_element_type=jnp.float32)
        gates = gates + b_ref[step * lps + j]     # bias is VMEM-resident

        # PyTorch LSTMCell gate order: input, forget, cell(g), output.
        i_g = jax.nn.sigmoid(gates[:, 0 * H:1 * H])
        f_g = jax.nn.sigmoid(gates[:, 1 * H:2 * H])
        g_g = jnp.tanh(gates[:, 2 * H:3 * H])
        o_g = jax.nn.sigmoid(gates[:, 3 * H:4 * H])

        c_new = f_g * c_ref[j].astype(jnp.float32) + i_g * g_g
        h_new = o_g * jnp.tanh(c_new)

        hn_ref[j] = h_new.astype(hn_ref.dtype)
        cn_ref[j] = c_new.astype(cn_ref.dtype)

        # Carry x_cur = h_new for the next layer.
        xh_ref[:, :H] = h_new.astype(xh_ref.dtype)

        # Cheap insurance: clear stale external-input columns once, so later
        # layers do not depend on zero-padded weight rows being present.
        if k_in > H and j == 0:
            @pl.when(step == 0)
            def _():
                xh_ref[:, H:k_in] = jnp.zeros((B, k_in - H), xh_ref.dtype)


@jax.jit
def lstm_block_forward(x, h_prev, c_prev, w_stack, b_stack):
    """Mirrors LSTMBlock.forward: stacked LSTM cells over one time step."""
    L, B, H = h_prev.shape
    k_in = w_stack.shape[1] - H
    G = 4 * H

    # Pad batch to a multiple of 16 (full bf16 (16,128) vregs) and pad x on
    # the feature axis up to k_in; cast x to bf16 once here.
    B_pad = _round_up(B, 16)
    x_pad = jnp.zeros((B_pad, k_in), jnp.bfloat16)
    x_pad = x_pad.at[:B, :x.shape[1]].set(x.astype(jnp.bfloat16))
    h_pad = jnp.zeros((L, B_pad, H), h_prev.dtype).at[:, :B, :].set(h_prev)
    c_pad = jnp.zeros((L, B_pad, H), c_prev.dtype).at[:, :B, :].set(c_prev)

    lps = _choose_layers_per_step(L, (k_in + H) * G * 2)   # bf16 weight tile
    grid = (L // lps,)

    hn, cn = pl.pallas_call(
        _lstm_block_kernel,
        out_shape=(
            jax.ShapeDtypeStruct((L, B_pad, H), jnp.float32),
            jax.ShapeDtypeStruct((L, B_pad, H), jnp.float32),
        ),
        grid_spec=pltpu.PrefetchScalarGridSpec(
            num_scalar_prefetch=0,
            grid=grid,
            in_specs=[
                pl.BlockSpec((B_pad, k_in), lambda s: (0, 0)),          # x (resident)
                pl.BlockSpec((lps, B_pad, H), lambda s: (s, 0, 0)),     # h_prev group
                pl.BlockSpec((lps, B_pad, H), lambda s: (s, 0, 0)),     # c_prev group
                pl.BlockSpec((lps, k_in + H, G), lambda s: (s, 0, 0)),  # fused W^T (bf16)
                pl.BlockSpec((L, 1, G), lambda s: (0, 0, 0)),           # bias (resident)
            ],
            out_specs=(
                pl.BlockSpec((lps, B_pad, H), lambda s: (s, 0, 0)),     # hn group
                pl.BlockSpec((lps, B_pad, H), lambda s: (s, 0, 0)),     # cn group
            ),
            scratch_shapes=[pltpu.VMEM((B_pad, k_in + H), jnp.bfloat16)],
        ),
        compiler_params=pltpu.CompilerParams(
            dimension_semantics=("arbitrary",),   # layer axis is a serial chain
            vmem_limit_bytes=32 * 1024 * 1024,
        ),
    )(x_pad, h_pad, c_pad, w_stack, b_stack)

    return hn[:, :B], cn[:, :B]


def init_lstm_block_params(key, input_size, hidden_size, num_layers,
                           dtype=jnp.float32):
    """torch-style uniform(-1/sqrt(H), 1/sqrt(H)); returns stacked fused params.

    w_stack: (L, k_in + H, 4H) bfloat16   -- [W_ih^T (zero-padded to k_in rows); W_hh^T]
    b_stack: (L, 1, 4H)        float32    -- b_ih + b_hh
    """
    H = hidden_size
    k_in = _round_up(max(input_size, H), 128)
    bound = 1.0 / (H ** 0.5)
    w_list, b_list = [], []
    in_feats = input_size
    for _ in range(num_layers):
        key, k1, k2, k3, k4 = jax.random.split(key, 5)
        w_ih = jax.random.uniform(k1, (4 * H, in_feats), dtype, -bound, bound)
        w_hh = jax.random.uniform(k2, (4 * H, H), dtype, -bound, bound)
        b_ih = jax.random.uniform(k3, (4 * H,), dtype, -bound, bound)
        b_hh = jax.random.uniform(k4, (4 * H,), dtype, -bound, bound)
        w_ih_t = jnp.zeros((k_in, 4 * H), dtype).at[:in_feats, :].set(w_ih.T)
        w_fused = jnp.concatenate([w_ih_t, w_hh.T], axis=0)       # (k_in+H, 4H)
        w_list.append(w_fused)
        b_list.append((b_ih + b_hh).reshape(1, 4 * H))
        in_feats = H
    w_stack = jnp.stack(w_list).astype(jnp.bfloat16)
    b_stack = jnp.stack(b_list).astype(jnp.float32)
    return w_stack, b_stack


def _reference_forward(x, h_prev, c_prev, w_stack, b_stack, mirror_bf16):
    """Pure-JAX reference. mirror_bf16=True replicates the kernel's bf16 matmul
    inputs; mirror_bf16=False is the full-f32 semantic reference."""
    L, B, H = h_prev.shape
    k_in = w_stack.shape[1] - H
    x_cur = jnp.zeros((B, k_in), jnp.float32).at[:, :x.shape[1]].set(x)
    hn, cn = [], []
    for l in range(L):
        xh = jnp.concatenate([x_cur, h_prev[l].astype(jnp.float32)], axis=1)
        if mirror_bf16:
            gates = jnp.dot(xh.astype(jnp.bfloat16), w_stack[l],
                            preferred_element_type=jnp.float32)
        else:
            gates = jnp.dot(xh, w_stack[l].astype(jnp.float32),
                            preferred_element_type=jnp.float32)
        gates = gates + b_stack[l]
        i_g = jax.nn.sigmoid(gates[:, 0 * H:1 * H])
        f_g = jax.nn.sigmoid(gates[:, 1 * H:2 * H])
        g_g = jnp.tanh(gates[:, 2 * H:3 * H])
        o_g = jax.nn.sigmoid(gates[:, 3 * H:4 * H])
        c_new = f_g * c_prev[l].astype(jnp.float32) + i_g * g_g
        h_new = o_g * jnp.tanh(c_new)
        hn.append(h_new)
        cn.append(c_new)
        x_cur = jnp.zeros((B, k_in), jnp.float32).at[:, :H].set(h_new)
    return jnp.stack(hn), jnp.stack(cn)


if __name__ == "__main__":
    batch = 8
    input_size = 64
    hidden_size = 128
    num_layers = 2

    key = jax.random.PRNGKey(0)
    kx, kh, kc, kp = jax.random.split(key, 4)

    x = jax.random.normal(kx, (batch, input_size), jnp.float32)
    h_prev = jax.random.normal(kh, (num_layers, batch, hidden_size), jnp.float32)
    c_prev = jax.random.normal(kc, (num_layers, batch, hidden_size), jnp.float32)

    w_stack, b_stack = init_lstm_block_params(kp, input_size, hidden_size,
                                              num_layers)

    hn, cn = lstm_block_forward(x, h_prev, c_prev, w_stack, b_stack)
    hn, cn = jax.block_until_ready((hn, cn))

    assert hn.shape == (num_layers, batch, hidden_size)
    assert cn.shape == (num_layers, batch, hidden_size)

    # Tight check vs. a reference that mirrors the kernel's bf16 matmul inputs.
    hn_bf, cn_bf = _reference_forward(x, h_prev, c_prev, w_stack, b_stack,
                                      mirror_bf16=True)
    assert jnp.allclose(hn, hn_bf, atol=1e-3, rtol=1e-3)
    assert jnp.allclose(cn, cn_bf, atol=1e-3, rtol=1e-3)

    # Looser semantic check vs. the full-f32 LSTM math (bf16 matmul rounding
    # is the only difference).
    hn_32, cn_32 = _reference_forward(x, h_prev, c_prev, w_stack, b_stack,
                                      mirror_bf16=False)
    assert jnp.allclose(hn, hn_32, atol=5e-2, rtol=5e-2)
    assert jnp.allclose(cn, cn_32, atol=5e-2, rtol=5e-2)

    print("KERNEL_OK")
</pallas_src>

<mosaic_0001>
module attributes {stable_mosaic.version = 11 : i64} {
  func.func @_lstm_block_kernel(%arg0: i32, %arg1: memref<16x128xbf16, #tpu.memory_space<vmem>>, %arg2: memref<2x16x128xf32, #tpu.memory_space<vmem>>, %arg3: memref<2x16x128xf32, #tpu.memory_space<vmem>>, %arg4: memref<2x256x512xbf16, #tpu.memory_space<vmem>>, %arg5: memref<2x1x512xf32, #tpu.memory_space<vmem>>, %arg6: memref<2x16x128xf32, #tpu.memory_space<vmem>>, %arg7: memref<2x16x128xf32, #tpu.memory_space<vmem>>, %arg8: memref<16x256xbf16, #tpu.memory_space<vmem>>) attributes {dimension_semantics = [#tpu.dimension_semantics<arbitrary>], iteration_bounds = array<i64: 1>, scalar_prefetch = 0 : i64, scratch_operands = 1 : i64, tpu.core_type = #tpu.core_type<tc>, window_params = [{pipeline_mode = #tpu.pipeline_mode<synchronous>, transform_indices = @transform_0, window_bounds = array<i64: 16, 128>}, {transform_indices = @transform_1, window_bounds = array<i64: 2, 16, 128>}, {transform_indices = @transform_2, window_bounds = array<i64: 2, 16, 128>}, {transform_indices = @transform_3, window_bounds = array<i64: 2, 256, 512>}, {pipeline_mode = #tpu.pipeline_mode<synchronous>, transform_indices = @transform_4, window_bounds = array<i64: 2, 1, 512>}, {transform_indices = @transform_5, window_bounds = array<i64: 2, 16, 128>}, {transform_indices = @transform_6, window_bounds = array<i64: 2, 16, 128>}]} {
    %c0_i32 = arith.constant 0 : i32
    %0 = arith.cmpi eq, %arg0, %c0_i32 : i32
    %1 = arith.extui %0 : i1 to i32
    %c0_i32_0 = arith.constant 0 : i32
    %2 = arith.cmpi ne, %1, %c0_i32_0 : i32
    scf.if %2 {
      %c0_53 = arith.constant 0 : index
      %c0_54 = arith.constant 0 : index
      %103 = vector.load %arg1[%c0_53, %c0_54] : memref<16x128xbf16, #tpu.memory_space<vmem>>, vector<16x128xbf16>
      %c0_55 = arith.constant 0 : index
      %c0_56 = arith.constant 0 : index
      %104 = vector.load %arg8[%c0_55, %c0_56] : memref<16x256xbf16, #tpu.memory_space<vmem>>, vector<16x128xbf16>
      tpu.vector_store %arg8[%c0_55, %c0_56], %103 {strides = array<i32>} : memref<16x256xbf16, #tpu.memory_space<vmem>>, vector<16x128xbf16>,
    } else {
    }
    %c0 = arith.constant 0 : index
    %c0_1 = arith.constant 0 : index
    %c0_2 = arith.constant 0 : index
    %3 = vector.load %arg2[%c0, %c0_1, %c0_2] : memref<2x16x128xf32, #tpu.memory_space<vmem>>, vector<1x16x128xf32>
    %4 = vector.shape_cast %3 : vector<1x16x128xf32> to vector<16x128xf32>
    %5 = arith.truncf %4 : vector<16x128xf32> to vector<16x128xbf16>
    %c0_3 = arith.constant 0 : index
    %c128 = arith.constant 128 : index
    %6 = vector.load %arg8[%c0_3, %c128] : memref<16x256xbf16, #tpu.memory_space<vmem>>, vector<16x128xbf16>
    tpu.vector_store %arg8[%c0_3, %c128], %5 {strides = array<i32>} : memref<16x256xbf16, #tpu.memory_space<vmem>>, vector<16x128xbf16>,
    %c0_4 = arith.constant 0 : index
    %c0_5 = arith.constant 0 : index
    %7 = vector.load %arg8[%c0_4, %c0_5] : memref<16x256xbf16, #tpu.memory_space<vmem>>, vector<16x256xbf16>
    %c0_6 = arith.constant 0 : index
    %c0_7 = arith.constant 0 : index
    %c0_8 = arith.constant 0 : index
    %8 = vector.load %arg4[%c0_6, %c0_7, %c0_8] : memref<2x256x512xbf16, #tpu.memory_space<vmem>>, vector<1x256x512xbf16>
    %9 = vector.shape_cast %8 : vector<1x256x512xbf16> to vector<256x512xbf16>
    %cst = arith.constant dense<0.000000e+00> : vector<16x512xf32>
    %10 = tpu.matmul %7, %9, %cst {dimension_numbers = #tpu.dot_dimension_numbers<[1], [0], [0], [1], [0, 0, 1, 1], [], []>} : vector<16x256xbf16>, vector<256x512xbf16>, vector<16x512xf32> -> vector<16x512xf32>
    %c2_i32 = arith.constant 2 : i32
    %11 = arith.muli %arg0, %c2_i32 : i32
    %c0_i32_9 = arith.constant 0 : i32
    %12 = arith.addi %11, %c0_i32_9 : i32
    %13 = arith.index_cast %12 : i32 to index
    %c0_10 = arith.constant 0 : index
    %c0_11 = arith.constant 0 : index
    %14 = vector.load %arg5[%13, %c0_10, %c0_11] : memref<2x1x512xf32, #tpu.memory_space<vmem>>, vector<1x1x512xf32>
    %15 = vector.shape_cast %14 : vector<1x1x512xf32> to vector<1x512xf32>
    %16 = vector.broadcast %15 : vector<1x512xf32> to vector<16x512xf32>
    %17 = arith.addf %10, %16 : vector<16x512xf32>
    %18 = vector.extract_strided_slice %17 {offsets = [0, 0], sizes = [16, 128], strides = [1, 1]} : vector<16x512xf32> to vector<16x128xf32>
    %19 = arith.negf %18 : vector<16x128xf32>
    %20 = math.exp %19 : vector<16x128xf32>
    %cst_12 = arith.constant 1.000000e+00 : f32
    %21 = vector.broadcast %cst_12 : f32 to vector<16x128xf32>
    %22 = arith.addf %21, %20 : vector<16x128xf32>
    %23 = arith.divf %21, %22 : vector<16x128xf32>
    %24 = vector.extract_strided_slice %17 {offsets = [0, 128], sizes = [16, 128], strides = [1, 1]} : vector<16x512xf32> to vector<16x128xf32>
    %25 = arith.negf %24 : vector<16x128xf32>
    %26 = math.exp %25 : vector<16x128xf32>
    %cst_13 = arith.constant 1.000000e+00 : f32
    %27 = vector.broadcast %cst_13 : f32 to vector<16x128xf32>
    %28 = arith.addf %27, %26 : vector<16x128xf32>
    %29 = arith.divf %27, %28 : vector<16x128xf32>
    %30 = vector.extract_strided_slice %17 {offsets = [0, 256], sizes = [16, 128], strides = [1, 1]} : vector<16x512xf32> to vector<16x128xf32>
    %31 = math.tanh %30 : vector<16x128xf32>
    %32 = vector.extract_strided_slice %17 {offsets = [0, 384], sizes = [16, 128], strides = [1, 1]} : vector<16x512xf32> to vector<16x128xf32>
    %33 = arith.negf %32 : vector<16x128xf32>
    %34 = math.exp %33 : vector<16x128xf32>
    %cst_14 = arith.constant 1.000000e+00 : f32
    %35 = vector.broadcast %cst_14 : f32 to vector<16x128xf32>
    %36 = arith.addf %35, %34 : vector<16x128xf32>
    %37 = arith.divf %35, %36 : vector<16x128xf32>
    %c0_15 = arith.constant 0 : index
    %c0_16 = arith.constant 0 : index
    %c0_17 = arith.constant 0 : index
    %38 = vector.load %arg3[%c0_15, %c0_16, %c0_17] : memref<2x16x128xf32, #tpu.memory_space<vmem>>, vector<1x16x128xf32>
    %39 = vector.shape_cast %38 : vector<1x16x128xf32> to vector<16x128xf32>
    %40 = arith.mulf %29, %39 : vector<16x128xf32>
    %41 = arith.mulf %23, %31 : vector<16x128xf32>
    %42 = arith.addf %40, %41 : vector<16x128xf32>
    %43 = math.tanh %42 : vector<16x128xf32>
    %44 = arith.mulf %37, %43 : vector<16x128xf32>
    %c0_18 = arith.constant 0 : index
    %c0_19 = arith.constant 0 : index
    %c0_20 = arith.constant 0 : index
    %45 = vector.load %arg6[%c0_18, %c0_19, %c0_20] : memref<2x16x128xf32, #tpu.memory_space<vmem>>, vector<1x16x128xf32>
    %46 = vector.shape_cast %45 : vector<1x16x128xf32> to vector<16x128xf32>
    %47 = vector.shape_cast %44 : vector<16x128xf32> to vector<1x16x128xf32>
    tpu.vector_store %arg6[%c0_18, %c0_19, %c0_20], %47 {strides = array<i32>} : memref<2x16x128xf32, #tpu.memory_space<vmem>>, vector<1x16x128xf32>,
    %c0_21 = arith.constant 0 : index
    %c0_22 = arith.constant 0 : index
    %c0_23 = arith.constant 0 : index
    %48 = vector.load %arg7[%c0_21, %c0_22, %c0_23] : memref<2x16x128xf32, #tpu.memory_space<vmem>>, vector<1x16x128xf32>
    %49 = vector.shape_cast %48 : vector<1x16x128xf32> to vector<16x128xf32>
    %50 = vector.shape_cast %42 : vector<16x128xf32> to vector<1x16x128xf32>
    tpu.vector_store %arg7[%c0_21, %c0_22, %c0_23], %50 {strides = array<i32>} : memref<2x16x128xf32, #tpu.memory_space<vmem>>, vector<1x16x128xf32>,
    %51 = arith.truncf %44 : vector<16x128xf32> to vector<16x128xbf16>
    %c0_24 = arith.constant 0 : index
    %c0_25 = arith.constant 0 : index
    %52 = vector.load %arg8[%c0_24, %c0_25] : memref<16x256xbf16, #tpu.memory_space<vmem>>, vector<16x128xbf16>
    tpu.vector_store %arg8[%c0_24, %c0_25], %51 {strides = array<i32>} : memref<16x256xbf16, #tpu.memory_space<vmem>>, vector<16x128xbf16>,
    %c1 = arith.constant 1 : index
    %c0_26 = arith.constant 0 : index
    %c0_27 = arith.constant 0 : index
    %53 = vector.load %arg2[%c1, %c0_26, %c0_27] : memref<2x16x128xf32, #tpu.memory_space<vmem>>, vector<1x16x128xf32>
    %54 = vector.shape_cast %53 : vector<1x16x128xf32> to vector<16x128xf32>
    %55 = arith.truncf %54 : vector<16x128xf32> to vector<16x128xbf16>
    %c0_28 = arith.constant 0 : index
    %c128_29 = arith.constant 128 : index
    %56 = vector.load %arg8[%c0_28, %c128_29] : memref<16x256xbf16, #tpu.memory_space<vmem>>, vector<16x128xbf16>
    tpu.vector_store %arg8[%c0_28, %c128_29], %55 {strides = array<i32>} : memref<16x256xbf16, #tpu.memory_space<vmem>>, vector<16x128xbf16>,
    %c0_30 = arith.constant 0 : index
    %c0_31 = arith.constant 0 : index
    %57 = vector.load %arg8[%c0_30, %c0_31] : memref<16x256xbf16, #tpu.memory_space<vmem>>, vector<16x256xbf16>
    %c1_32 = arith.constant 1 : index
    %c0_33 = arith.constant 0 : index
    %c0_34 = arith.constant 0 : index
    %58 = vector.load %arg4[%c1_32, %c0_33, %c0_34] : memref<2x256x512xbf16, #tpu.memory_space<vmem>>, vector<1x256x512xbf16>
    %59 = vector.shape_cast %58 : vector<1x256x512xbf16> to vector<256x512xbf16>
    %cst_35 = arith.constant dense<0.000000e+00> : vector<16x512xf32>
    %60 = tpu.matmul %57, %59, %cst_35 {dimension_numbers = #tpu.dot_dimension_numbers<[1], [0], [0], [1], [0, 0, 1, 1], [], []>} : vector<16x256xbf16>, vector<256x512xbf16>, vector<16x512xf32> -> vector<16x512xf32>
    %c2_i32_36 = arith.constant 2 : i32
    %61 = arith.muli %arg0, %c2_i32_36 : i32
    %c1_i32 = arith.constant 1 : i32
    %62 = arith.addi %61, %c1_i32 : i32
    %63 = arith.index_cast %62 : i32 to index
    %c0_37 = arith.constant 0 : index
    %c0_38 = arith.constant 0 : index
    %64 = vector.load %arg5[%63, %c0_37, %c0_38] : memref<2x1x512xf32, #tpu.memory_space<vmem>>, vector<1x1x512xf32>
    %65 = vector.shape_cast %64 : vector<1x1x512xf32> to vector<1x512xf32>
    %66 = vector.broadcast %65 : vector<1x512xf32> to vector<16x512xf32>
    %67 = arith.addf %60, %66 : vector<16x512xf32>
    %68 = vector.extract_strided_slice %67 {offsets = [0, 0], sizes = [16, 128], strides = [1, 1]} : vector<16x512xf32> to vector<16x128xf32>
    %69 = arith.negf %68 : vector<16x128xf32>
    %70 = math.exp %69 : vector<16x128xf32>
    %cst_39 = arith.constant 1.000000e+00 : f32
    %71 = vector.broadcast %cst_39 : f32 to vector<16x128xf32>
    %72 = arith.addf %71, %70 : vector<16x128xf32>
    %73 = arith.divf %71, %72 : vector<16x128xf32>
    %74 = vector.extract_strided_slice %67 {offsets = [0, 128], sizes = [16, 128], strides = [1, 1]} : vector<16x512xf32> to vector<16x128xf32>
    %75 = arith.negf %74 : vector<16x128xf32>
    %76 = math.exp %75 : vector<16x128xf32>
    %cst_40 = arith.constant 1.000000e+00 : f32
    %77 = vector.broadcast %cst_40 : f32 to vector<16x128xf32>
    %78 = arith.addf %77, %76 : vector<16x128xf32>
    %79 = arith.divf %77, %78 : vector<16x128xf32>
    %80 = vector.extract_strided_slice %67 {offsets = [0, 256], sizes = [16, 128], strides = [1, 1]} : vector<16x512xf32> to vector<16x128xf32>
    %81 = math.tanh %80 : vector<16x128xf32>
    %82 = vector.extract_strided_slice %67 {offsets = [0, 384], sizes = [16, 128], strides = [1, 1]} : vector<16x512xf32> to vector<16x128xf32>
    %83 = arith.negf %82 : vector<16x128xf32>
    %84 = math.exp %83 : vector<16x128xf32>
    %cst_41 = arith.constant 1.000000e+00 : f32
    %85 = vector.broadcast %cst_41 : f32 to vector<16x128xf32>
    %86 = arith.addf %85, %84 : vector<16x128xf32>
    %87 = arith.divf %85, %86 : vector<16x128xf32>
    %c1_42 = arith.constant 1 : index
    %c0_43 = arith.constant 0 : index
    %c0_44 = arith.constant 0 : index
    %88 = vector.load %arg3[%c1_42, %c0_43, %c0_44] : memref<2x16x128xf32, #tpu.memory_space<vmem>>, vector<1x16x128xf32>
    %89 = vector.shape_cast %88 : vector<1x16x128xf32> to vector<16x128xf32>
    %90 = arith.mulf %79, %89 : vector<16x128xf32>
    %91 = arith.mulf %73, %81 : vector<16x128xf32>
    %92 = arith.addf %90, %91 : vector<16x128xf32>
    %93 = math.tanh %92 : vector<16x128xf32>
    %94 = arith.mulf %87, %93 : vector<16x128xf32>
    %c1_45 = arith.constant 1 : index
    %c0_46 = arith.constant 0 : index
    %c0_47 = arith.constant 0 : index
    %95 = vector.load %arg6[%c1_45, %c0_46, %c0_47] : memref<2x16x128xf32, #tpu.memory_space<vmem>>, vector<1x16x128xf32>
    %96 = vector.shape_cast %95 : vector<1x16x128xf32> to vector<16x128xf32>
    %97 = vector.shape_cast %94 : vector<16x128xf32> to vector<1x16x128xf32>
    tpu.vector_store %arg6[%c1_45, %c0_46, %c0_47], %97 {strides = array<i32>} : memref<2x16x128xf32, #tpu.memory_space<vmem>>, vector<1x16x128xf32>,
    %c1_48 = arith.constant 1 : index
    %c0_49 = arith.constant 0 : index
    %c0_50 = arith.constant 0 : index
    %98 = vector.load %arg7[%c1_48, %c0_49, %c0_50] : memref<2x16x128xf32, #tpu.memory_space<vmem>>, vector<1x16x128xf32>
    %99 = vector.shape_cast %98 : vector<1x16x128xf32> to vector<16x128xf32>
    %100 = vector.shape_cast %92 : vector<16x128xf32> to vector<1x16x128xf32>
    tpu.vector_store %arg7[%c1_48, %c0_49, %c0_50], %100 {strides = array<i32>} : memref<2x16x128xf32, #tpu.memory_space<vmem>>, vector<1x16x128xf32>,
    %101 = arith.truncf %94 : vector<16x128xf32> to vector<16x128xbf16>
    %c0_51 = arith.constant 0 : index
    %c0_52 = arith.constant 0 : index
    %102 = vector.load %arg8[%c0_51, %c0_52] : memref<16x256xbf16, #tpu.memory_space<vmem>>, vector<16x128xbf16>
    tpu.vector_store %arg8[%c0_51, %c0_52], %101 {strides = array<i32>} : memref<16x256xbf16, #tpu.memory_space<vmem>>, vector<16x128xbf16>,
    return
  }
  func.func @transform_0(%arg0: i32) -> (i32, i32) {
    %c0_i32 = arith.constant 0 : i32
    %c0_i32_0 = arith.constant 0 : i32
    %c0_i32_1 = arith.constant 0 : i32
    return %c0_i32, %c0_i32_0 : i32, i32
  }
  func.func @transform_1(%arg0: i32) -> (i32, i32, i32) {
    %c0_i32 = arith.constant 0 : i32
    %c0_i32_0 = arith.constant 0 : i32
    %c0_i32_1 = arith.constant 0 : i32
    return %arg0, %c0_i32, %c0_i32_0 : i32, i32, i32
  }
  func.func @transform_2(%arg0: i32) -> (i32, i32, i32) {
    %c0_i32 = arith.constant 0 : i32
    %c0_i32_0 = arith.constant 0 : i32
    %c0_i32_1 = arith.constant 0 : i32
    return %arg0, %c0_i32, %c0_i32_0 : i32, i32, i32
  }
  func.func @transform_3(%arg0: i32) -> (i32, i32, i32) {
    %c0_i32 = arith.constant 0 : i32
    %c0_i32_0 = arith.constant 0 : i32
    %c0_i32_1 = arith.constant 0 : i32
    return %arg0, %c0_i32, %c0_i32_0 : i32, i32, i32
  }
  func.func @transform_4(%arg0: i32) -> (i32, i32, i32) {
    %c0_i32 = arith.constant 0 : i32
    %c0_i32_0 = arith.constant 0 : i32
    %c0_i32_1 = arith.constant 0 : i32
    %c0_i32_2 = arith.constant 0 : i32
    return %c0_i32, %c0_i32_0, %c0_i32_1 : i32, i32, i32
  }
  func.func @transform_5(%arg0: i32) -> (i32, i32, i32) {
    %c0_i32 = arith.constant 0 : i32
    %c0_i32_0 = arith.constant 0 : i32
    %c0_i32_1 = arith.constant 0 : i32
    return %arg0, %c0_i32, %c0_i32_0 : i32, i32, i32
  }
  func.func @transform_6(%arg0: i32) -> (i32, i32, i32) {
    %c0_i32 = arith.constant 0 : i32
    %c0_i32_0 = arith.constant 0 : i32
    %c0_i32_1 = arith.constant 0 : i32
    return %arg0, %c0_i32, %c0_i32_0 : i32, i32, i32
  }
}

</mosaic_0001>

<bundles_post_ra>
// kernel: lstm_block_forward.1
= control target key start
LH: loop header
LB: loop body
LE: loop exit
PB: predicated region body
PF: predicated region fallthrough
CT: control target
= control target key end

     0   :  { %12 = vsyncpa [#allocation4], 0  ;;  %s2161_s24 = smov [#allocation3]   ;;  %s2162_s26 = smov 256   ;;  %s2481_s0 = inlined_call_operand.vmem [shape: bf16[16,128], index: 0, kind: input, shape index: {}]   ;;  %s2482_s1 = inlined_call_operand.vmem [shape: f32[2,16,128], index: 1, kind: input, shape index: {}]   ;;  %s2483_s2 = inlined_call_operand.vmem [shape: f32[2,16,128], index: 2, kind: input, shape index: {}]   ;;  %s2484_s3 = inlined_call_operand.hbm [shape: bf16[2,256,512], index: 3, kind: input, shape index: {}]   ;;  %s2485_s4 = inlined_call_operand.vmem [shape: f32[2,1,512], index: 4, kind: input, shape index: {}]   ;;  %s2486_s5 = inlined_call_operand.vmem [shape: f32[2,16,128], index: 5, kind: output, shape index: {0}]   ;;  %s2487_s6 = inlined_call_operand.vmem [shape: f32[2,16,128], index: 6, kind: output, shape index: {1}]  }
   0x1   :  { %s23_s23 = sshll.u32 %s2484_s3, 4  ;;  %s25_s25 = sshll.u32 %s2161_s24, 4  ;;  %s24_s23 = int_to_ptr.hbm [resolvable:$true] %s23_s23  ;;  %s26_s25 = int_to_ptr.vmem [resolvable:$true] %s25_s25 }
   0x2   :  { %s2163_s27 = smov 16  }
   0x3   :  { %31 = dma.hbm_to_vmem [thread:$0]  %s24_s23, 16384, %s26_s25, [#allocation4], %s2162_s26, %s2162_s26, %s2163_s27  }
   0x4   :  { %2159 = dma.done.wait [#allocation4], 16384  }
   0x5   :  { %2160 = vsyncadd [#allocation4], 4294950912  ;;  %v1509_v0 = vld [vmem:[#allocation3 + $0xe0] sm:$0xf]  ;;  %v1968_v1 = vld [vmem:[#allocation3 + $0xec] sm:$0xf0] }
   0x6   :  { %v1966_v2 = vld [vmem:[#allocation3 + $0xe4] sm:$0xf]  ;;  %v1510_v3 = vor.u32 %v1968_v1, %v1509_v0  ;;  %v1511_v4 = vld [vmem:[#allocation3 + $0xf0] sm:$0xf0]  ;;  %v1637_v9 = vld [vmem:[#allocation3 + $0x1e0] sm:$0xf] }
   0x7   :  { %v1998_v5 = vld [vmem:[#allocation3 + $0x1e4] sm:$0xf]  ;;  %v1639_v6 = vld [vmem:[#allocation3 + $0x1f0] sm:$0xf0]  ;;  %v1514_v7 = vor.u32 %v1966_v2, %v1511_v4  ;;  %v2000_v10 = vld [vmem:[#allocation3 + $0x1ec] sm:$0xf0] }
   0x8   :  { %v1642_v8 = vor.u32 %v1998_v5, %v1639_v6  ;;  %v1493_v11 = vld [vmem:[#allocation3 + $0xc0] sm:$0xf]  ;;  %461 = vmatpush.bf16.msra.mxu0 %v1510_v3  ;;  %v1638_v12 = vor.u32 %v2000_v10, %v1637_v9  ;;  %v1964_v13 = vld [vmem:[#allocation3 + $0xcc] sm:$0xf0]  ;;  %v1962_v14 = vld [vmem:[#allocation3 + $0xc4] sm:$0xf] }
   0x9   :  { %v1495_v15 = vld [vmem:[#allocation3 + $0xd0] sm:$0xf0]  ;;  %489 = vmatpush.bf16.msra.mxu2 %v1514_v7  ;;  %v1494_v16 = vor.u32 %v1964_v13, %v1493_v11  ;;  %v1994_v18 = vld [vmem:[#allocation3 + $0x1c4] sm:$0xf]  ;;  %v1621_v20 = vld [vmem:[#allocation3 + $0x1c0] sm:$0xf] }
   0xa   :  { %503 = vmatpush.bf16.msra.mxu3 %v1642_v8  ;;  %v1498_v17 = vor.u32 %v1962_v14, %v1495_v15  ;;  %v1623_v19 = vld [vmem:[#allocation3 + $0x1d0] sm:$0xf0]  ;;  %475 = vmatpush.bf16.msra.mxu1 %v1638_v12  ;;  %v1996_v22 = vld [vmem:[#allocation3 + $0x1cc] sm:$0xf0]  ;;  %v1477_v23 = vld [vmem:[#allocation3 + $0xa0] sm:$0xf] }
   0xb   :  { %v1626_v21 = vor.u32 %v1994_v18, %v1623_v19  ;;  %v1960_v24 = vld [vmem:[#allocation3 + $0xac] sm:$0xf0]  ;;  %v1622_v25 = vor.u32 %v1996_v22, %v1621_v20  ;;  %v1958_v26 = vld [vmem:[#allocation3 + $0xa4] sm:$0xf]  ;;  %v1479_v27 = vld [vmem:[#allocation3 + $0xb0] sm:$0xf0] }
   0xc   :  { %v1990_v28 = vld [vmem:[#allocation3 + $0x1a4] sm:$0xf]  ;;  %462 = vmatpush.bf16.msra.mxu0 %v1494_v16  ;;  %v1478_v29 = vor.u32 %v1960_v24, %v1477_v23  ;;  %v1607_v30 = vld [vmem:[#allocation3 + $0x1b0] sm:$0xf0]  ;;  %v1605_v31 = vld [vmem:[#allocation3 + $0x1a0] sm:$0xf]  ;;  %v1482_v33 = vor.u32 %v1958_v26, %v1479_v27 }
   0xd   :  { %v1992_v32 = vld [vmem:[#allocation3 + $0x1ac] sm:$0xf0]  ;;  %490 = vmatpush.bf16.msra.mxu2 %v1498_v17  ;;  %v1610_v34 = vor.u32 %v1990_v28, %v1607_v30  ;;  %v1461_v35 = vld [vmem:[#allocation3 + $0x80] sm:$0xf]  ;;  %v1954_v37 = vld [vmem:[#allocation3 + $0x84] sm:$0xf] }
   0xe   :  { %504 = vmatpush.bf16.msra.mxu3 %v1626_v21  ;;  %v1956_v36 = vld [vmem:[#allocation3 + $0x8c] sm:$0xf0]  ;;  %476 = vmatpush.bf16.msra.mxu1 %v1622_v25  ;;  %v1606_v38 = vor.u32 %v1992_v32, %v1605_v31  ;;  %v1463_v39 = vld [vmem:[#allocation3 + $0x90] sm:$0xf0]  ;;  %v1986_v40 = vld [vmem:[#allocation3 + $0x184] sm:$0xf] }
   0xf   :  { %v1591_v41 = vld [vmem:[#allocation3 + $0x190] sm:$0xf0]  ;;  %v1589_v42 = vld [vmem:[#allocation3 + $0x180] sm:$0xf]  ;;  %v1988_v43 = vld [vmem:[#allocation3 + $0x18c] sm:$0xf0]  ;;  %v1462_v44 = vor.u32 %v1956_v36, %v1461_v35  ;;  %v1466_v45 = vor.u32 %v1954_v37, %v1463_v39 }
  0x10   :  { %463 = vmatpush.bf16.msra.mxu0 %v1478_v29  ;;  %v1594_v46 = vor.u32 %v1986_v40, %v1591_v41  ;;  %v1445_v47 = vld [vmem:[#allocation3 + $0x60] sm:$0xf]  ;;  %v1952_v48 = vld [vmem:[#allocation3 + $0x6c] sm:$0xf0]  ;;  %v1950_v49 = vld [vmem:[#allocation3 + $0x64] sm:$0xf]  ;;  %v1590_v50 = vor.u32 %v1988_v43, %v1589_v42 }
  0x11   :  { %491 = vmatpush.bf16.msra.mxu2 %v1482_v33  ;;  %v1447_v51 = vld [vmem:[#allocation3 + $0x70] sm:$0xf0]  ;;  %v1982_v52 = vld [vmem:[#allocation3 + $0x164] sm:$0xf]  ;;  %v1573_v54 = vld [vmem:[#allocation3 + $0x160] sm:$0xf]  ;;  %v1446_v56 = vor.u32 %v1952_v48, %v1445_v47 }
  0x12   :  { %505 = vmatpush.bf16.msra.mxu3 %v1610_v34  ;;  %477 = vmatpush.bf16.msra.mxu1 %v1606_v38  ;;  %v1575_v53 = vld [vmem:[#allocation3 + $0x170] sm:$0xf0]  ;;  %v1984_v55 = vld [vmem:[#allocation3 + $0x16c] sm:$0xf0]  ;;  %v1450_v57 = vor.u32 %v1950_v49, %v1447_v51  ;;  %v1429_v59 = vld [vmem:[#allocation3 + $0x40] sm:$0xf] }
  0x13   :  { %v1578_v58 = vor.u32 %v1982_v52, %v1575_v53  ;;  %v1948_v60 = vld [vmem:[#allocation3 + $0x4c] sm:$0xf0]  ;;  %v1946_v61 = vld [vmem:[#allocation3 + $0x44] sm:$0xf]  ;;  %v1574_v62 = vor.u32 %v1984_v55, %v1573_v54  ;;  %v1431_v63 = vld [vmem:[#allocation3 + $0x50] sm:$0xf0] }
  0x14   :  { %464 = vmatpush.bf16.msra.mxu0 %v1462_v44  ;;  %v1978_v0 = vld [vmem:[#allocation3 + $0x144] sm:$0xf]  ;;  %v1559_v1 = vld [vmem:[#allocation3 + $0x150] sm:$0xf0]  ;;  %v1557_v2 = vld [vmem:[#allocation3 + $0x140] sm:$0xf]  ;;  %v1430_v4 = vor.u32 %v1948_v60, %v1429_v59  ;;  %v1434_v6 = vor.u32 %v1946_v61, %v1431_v63 }
  0x15   :  { %492 = vmatpush.bf16.msra.mxu2 %v1466_v45  ;;  %v1980_v3 = vld [vmem:[#allocation3 + $0x14c] sm:$0xf0]  ;;  %v1413_v5 = vld [vmem:[#allocation3 + $0x20] sm:$0xf]  ;;  %v1562_v7 = vor.u32 %v1978_v0, %v1559_v1  ;;  %v1942_v9 = vld [vmem:[#allocation3 + $0x24] sm:$0xf] }
  0x16   :  { %506 = vmatpush.bf16.msra.mxu3 %v1594_v46  ;;  %478 = vmatpush.bf16.msra.mxu1 %v1590_v50  ;;  %v1944_v8 = vld [vmem:[#allocation3 + $0x2c] sm:$0xf0]  ;;  %v1415_v10 = vld [vmem:[#allocation3 + $0x30] sm:$0xf0]  ;;  %v1558_v11 = vor.u32 %v1980_v3, %v1557_v2  ;;  %v1974_v12 = vld [vmem:[#allocation3 + $0x124] sm:$0xf] }
  0x17   :  { %v1543_v13 = vld [vmem:[#allocation3 + $0x130] sm:$0xf0]  ;;  %v1541_v14 = vld [vmem:[#allocation3 + $0x120] sm:$0xf]  ;;  %v1976_v15 = vld [vmem:[#allocation3 + $0x12c] sm:$0xf0]  ;;  %v1414_v18 = vor.u32 %v1944_v8, %v1413_v5  ;;  %v1418_v24 = vor.u32 %v1942_v9, %v1415_v10 }
  0x18   :  { %465 = vmatpush.bf16.msra.mxu0 %v1446_v56  ;;  %v1397_v16 = vld [vmem:[#allocation3] sm:$0xf]  ;;  %v1940_v17 = vld [vmem:[#allocation3 + $0xc] sm:$0xf0]  ;;  %v1938_v19 = vld [vmem:[#allocation3 + $0x4] sm:$0xf]  ;;  %v1546_v25 = vor.u32 %v1974_v12, %v1543_v13  ;;  %v1542_v28 = vor.u32 %v1976_v15, %v1541_v14 }
  0x19   :  { %493 = vmatpush.bf16.msra.mxu2 %v1450_v57  ;;  %v1399_v20 = vld [vmem:[#allocation3 + $0x10] sm:$0xf0]  ;;  %v1970_v21 = vld [vmem:[#allocation3 + $0x104] sm:$0xf]  ;;  %v42_v22 = vld [vmem:[%s2481_s0] sm:$0xf]  ;;  %v1398_v37 = vor.u32 %v1940_v17, %v1397_v16 }
  0x1a   :  { %507 = vmatpush.bf16.msra.mxu3 %v1578_v58  ;;  %479 = vmatpush.bf16.msra.mxu1 %v1574_v62  ;;  %v43_v23 = vld [vmem:[%s2481_s0 + $0x4] sm:$0xf]  ;;  %v1517_v27 = vld [vmem:[#allocation3 + $0xe8] sm:$0xf]  ;;  %44 = vst [vmem:[#allocation2] sm:$0xf] %v42_v22  ;;  %v1402_v41 = vor.u32 %v1938_v19, %v1399_v20 }
  0x1b   :  { %v1527_v26 = vld [vmem:[#allocation3 + $0x110] sm:$0xf0]  ;;  %v1969_v29 = vld [vmem:[#allocation3 + $0xf4] sm:$0xf0]  ;;  %45 = vst [vmem:[#allocation2 + $0x8] sm:$0xf] %v43_v23 }
  0x1c   :  { %466 = vmatpush.bf16.msra.mxu0 %v1430_v4  ;;  %v46_v30 = vld [vmem:[%s2482_s1] sm:$0xff]  ;;  %v47_v31 = vld [vmem:[%s2482_s1 + $0x8] sm:$0xff]  ;;  %v1967_v32 = vld [vmem:[#allocation3 + $0xec] sm:$0xf]  ;;  %v1530_v42 = vor.u32 %v1970_v21, %v1527_v26  ;;  %v1518_v45 = vor.u32 %v1969_v29, %v1517_v27 }
  0x1d   :  { %494 = vmatpush.bf16.msra.mxu2 %v1434_v6  ;;  %v1519_v33 = vld [vmem:[#allocation3 + $0xf8] sm:$0xf0]  ;;  %v1999_v34 = vld [vmem:[#allocation3 + $0x1ec] sm:$0xf]  ;;  %v48_v35 = vpack.c.bf16 %v46_v30, %v46_v30  ;;  %v49_v36 = vpack.c.bf16 %v47_v31, %v47_v31  ;;  %v1525_v39 = vld [vmem:[#allocation3 + $0x100] sm:$0xf] }
  0x1e   :  { %508 = vmatpush.bf16.msra.mxu3 %v1562_v7  ;;  %480 = vmatpush.bf16.msra.mxu1 %v1558_v11  ;;  %v1647_v38 = vld [vmem:[#allocation3 + $0x1f8] sm:$0xf0]  ;;  %v1972_v40 = vld [vmem:[#allocation3 + $0x10c] sm:$0xf0]  ;;  %v1645_v43 = vld [vmem:[#allocation3 + $0x1e8] sm:$0xf]  ;;  %v1522_v46 = vor.u32 %v1967_v32, %v1519_v33 }
  0x1f   :  { %v2001_v44 = vld [vmem:[#allocation3 + $0x1f4] sm:$0xf0]  ;;  %50 = vst [vmem:[#allocation2 + $0x4] sm:$0xf] %v48_v35  ;;  %v1657_v47 = vld [vmem:[%s2482_s1 + $0x10] sm:$0xff]  ;;  %v1658_v48 = vld [vmem:[%s2482_s1 + $0x18] sm:$0xff]  ;;  %v1650_v50 = vor.u32 %v1999_v34, %v1647_v38  ;;  %v1526_v51 = vor.u32 %v1972_v40, %v1525_v39 }
  0x20   :  { %467 = vmatpush.bf16.msra.mxu0 %v1414_v18  ;;  %51 = vst [vmem:[#allocation2 + $0xc] sm:$0xf] %v49_v36  ;;  %v1501_v49 = vld [vmem:[#allocation3 + $0xc8] sm:$0xf]  ;;  %v1965_v52 = vld [vmem:[#allocation3 + $0xd4] sm:$0xf0]  ;;  %v1646_v56 = vor.u32 %v2001_v44, %v1645_v43  ;;  %v712_v60 = vpack.c.bf16 %v1657_v47, %v1657_v47  ;;  %v713_v61 = vpack.c.bf16 %v1658_v48, %v1658_v48 }
  0x21   :  { %495 = vmatpush.bf16.msra.mxu2 %v1418_v24  ;;  %v1963_v53 = vld [vmem:[#allocation3 + $0xcc] sm:$0xf]  ;;  %v1503_v54 = vld [vmem:[#allocation3 + $0xd8] sm:$0xf0]  ;;  %v1389_v55 = vld [vmem:[#allocation2] sm:$0xf]  ;;  %v1502_v1 = vor.u32 %v1965_v52, %v1501_v49 }
  0x22   :  { %509 = vmatpush.bf16.msra.mxu3 %v1546_v25  ;;  %481 = vmatpush.bf16.msra.mxu1 %v1542_v28  ;;  %v1995_v57 = vld [vmem:[#allocation3 + $0x1cc] sm:$0xf]  ;;  %v1631_v58 = vld [vmem:[#allocation3 + $0x1d8] sm:$0xf0]  ;;  %v1937_v59 = vld [vmem:[#allocation2 + $0x4] sm:$0xf0]  ;;  %v1506_v2 = vor.u32 %v1963_v53, %v1503_v54 }
  0x23   :  { %v1629_v62 = vld [vmem:[#allocation3 + $0x1c8] sm:$0xf]  ;;  %v1997_v63 = vld [vmem:[#allocation3 + $0x1d4] sm:$0xf0]  ;;  %v2220_v0 = vor.u32 %v1937_v59, %v1389_v55  ;;  %v1634_v5 = vor.u32 %v1995_v57, %v1631_v58  ;;  %v1959_v6 = vld [vmem:[#allocation3 + $0xac] sm:$0xf] }
  0x24   :  { %468 = vmatpush.bf16.msra.mxu0 %v1398_v37  ;;  %v1485_v3 = vld [vmem:[#allocation3 + $0xa8] sm:$0xf]  ;;  %v1961_v4 = vld [vmem:[#allocation3 + $0xb4] sm:$0xf0]  ;;  %v1487_v7 = vld [vmem:[#allocation3 + $0xb8] sm:$0xf0]  ;;  %v1630_v10 = vor.u32 %v1997_v63, %v1629_v62 }
  0x25   :  { %496 = vmatpush.bf16.msra.mxu2 %v1402_v41  ;;  %v1991_v8 = vld [vmem:[#allocation3 + $0x1ac] sm:$0xf]  ;;  %v1615_v11 = vld [vmem:[#allocation3 + $0x1b8] sm:$0xf0]  ;;  %v1613_v12 = vld [vmem:[#allocation3 + $0x1a8] sm:$0xf]  ;;  %v1486_v16 = vor.u32 %v1961_v4, %v1485_v3  ;;  %v1490_v17 = vor.u32 %v1959_v6, %v1487_v7 }
  0x26   :  { %510 = vmatpush.bf16.msra.mxu3 %v1530_v42  ;;  %482 = vmatpush.bf16.msra.mxu1 %v1526_v51  ;;  %v1936_v9 = vld [vmem:[#allocation2 + $0x4] sm:$0xf]  ;;  %v1993_v14 = vld [vmem:[#allocation3 + $0x1b4] sm:$0xf0]  ;;  %v1469_v18 = vld [vmem:[#allocation3 + $0x88] sm:$0xf]  ;;  %v1618_v19 = vor.u32 %v1991_v8, %v1615_v11 }
  0x27   :  { %v1391_v13 = vld [vmem:[#allocation2 + $0x8] sm:$0xf0]  ;;  %714 = vst [vmem:[#allocation2 + $0x4] sm:$0xf] %v712_v60  ;;  %469 = vmatmul.bf16.vlgmr.msra.gmra.mxu0 %v2220_v0  ;;  %v1957_v20 = vld [vmem:[#allocation3 + $0x94] sm:$0xf0]  ;;  %v1614_v23 = vor.u32 %v1993_v14, %v1613_v12 }
  0x28   :  { %517 = vmatpush.bf16.msrb.mxu0 %v1518_v45  ;;  %497 = vmatmul.bf16.vlgmr.msra.gmra.mxu2 %v2220_v0  ;;  %v2224_v15 = vor.u32 %v1936_v9, %v1391_v13  ;;  %715 = vst [vmem:[#allocation2 + $0xc] sm:$0xf] %v713_v61  ;;  %v1955_v21 = vld [vmem:[#allocation3 + $0x8c] sm:$0xf]  ;;  %v1471_v22 = vld [vmem:[#allocation3 + $0x98] sm:$0xf0]  ;;  %v1470_v28 = vor.u32 %v1957_v20, %v1469_v18 }
  0x29   :  { %545 = vmatpush.bf16.msrb.mxu2 %v1522_v46  ;;  %v1987_v24 = vld [vmem:[#allocation3 + $0x18c] sm:$0xf]  ;;  %v1599_v25 = vld [vmem:[#allocation3 + $0x198] sm:$0xf0]  ;;  %v1597_v26 = vld [vmem:[#allocation3 + $0x188] sm:$0xf]  ;;  %v1474_v29 = vor.u32 %v1955_v21, %v1471_v22 }
  0x2a   :  { %559 = vmatpush.bf16.msrb.mxu3 %v1650_v50  ;;  %531 = vmatpush.bf16.msrb.mxu1 %v1646_v56  ;;  %v1989_v27 = vld [vmem:[#allocation3 + $0x194] sm:$0xf0]  ;;  %v1453_v30 = vld [vmem:[#allocation3 + $0x68] sm:$0xf]  ;;  %v1602_v31 = vor.u32 %v1987_v24, %v1599_v25  ;;  %v1951_v33 = vld [vmem:[#allocation3 + $0x6c] sm:$0xf] }
  0x2b   :  { %511 = vmatmul.bf16.vlgmr.msra.gmra.mxu3 %v2224_v15  ;;  %483 = vmatmul.bf16.vlgmr.msra.gmra.mxu1 %v2224_v15  ;;  %v1953_v32 = vld [vmem:[#allocation3 + $0x74] sm:$0xf0]  ;;  %v1455_v34 = vld [vmem:[#allocation3 + $0x78] sm:$0xf0]  ;;  %v1598_v35 = vor.u32 %v1989_v27, %v1597_v26  ;;  %v1983_v36 = vld [vmem:[#allocation3 + $0x16c] sm:$0xf] }
  0x2c   :  { %518 = vmatpush.bf16.msrb.mxu0 %v1502_v1  ;;  %v1583_v37 = vld [vmem:[#allocation3 + $0x178] sm:$0xf0]  ;;  %v1581_v38 = vld [vmem:[#allocation3 + $0x168] sm:$0xf]  ;;  %v1985_v39 = vld [vmem:[#allocation3 + $0x174] sm:$0xf0]  ;;  %v1454_v40 = vor.u32 %v1953_v32, %v1453_v30  ;;  %v1458_v41 = vor.u32 %v1951_v33, %v1455_v34 }
  0x2d   :  { %546 = vmatpush.bf16.msrb.mxu2 %v1506_v2  ;;  %v1437_v42 = vld [vmem:[#allocation3 + $0x48] sm:$0xf]  ;;  %v1586_v43 = vor.u32 %v1983_v36, %v1583_v37  ;;  %v1949_v44 = vld [vmem:[#allocation3 + $0x54] sm:$0xf0]  ;;  %v1947_v45 = vld [vmem:[#allocation3 + $0x4c] sm:$0xf]  ;;  %v1582_v47 = vor.u32 %v1985_v39, %v1581_v38 }
  0x2e   :  { %560 = vmatpush.bf16.msrb.mxu3 %v1634_v5  ;;  %532 = vmatpush.bf16.msrb.mxu1 %v1630_v10  ;;  %v1439_v46 = vld [vmem:[#allocation3 + $0x58] sm:$0xf0]  ;;  %v1979_v48 = vld [vmem:[#allocation3 + $0x14c] sm:$0xf]  ;;  %v1565_v50 = vld [vmem:[#allocation3 + $0x148] sm:$0xf]  ;;  %v1438_v52 = vor.u32 %v1949_v44, %v1437_v42 }
  0x2f   :  { %v1567_v49 = vld [vmem:[#allocation3 + $0x158] sm:$0xf0]  ;;  %v1981_v51 = vld [vmem:[#allocation3 + $0x154] sm:$0xf0]  ;;  %v1442_v53 = vor.u32 %v1947_v45, %v1439_v46  ;;  %v1421_v54 = vld [vmem:[#allocation3 + $0x28] sm:$0xf] }
  0x30   :  { %519 = vmatpush.bf16.msrb.mxu0 %v1486_v16  ;;  %v1570_v55 = vor.u32 %v1979_v48, %v1567_v49  ;;  %v1945_v56 = vld [vmem:[#allocation3 + $0x34] sm:$0xf0]  ;;  %v1943_v57 = vld [vmem:[#allocation3 + $0x2c] sm:$0xf]  ;;  %v1423_v58 = vld [vmem:[#allocation3 + $0x38] sm:$0xf0]  ;;  %v1566_v59 = vor.u32 %v1981_v51, %v1565_v50 }
  0x31   :  { %547 = vmatpush.bf16.msrb.mxu2 %v1490_v17  ;;  %v1975_v60 = vld [vmem:[#allocation3 + $0x12c] sm:$0xf]  ;;  %v1551_v61 = vld [vmem:[#allocation3 + $0x138] sm:$0xf0]  ;;  %v1549_v62 = vld [vmem:[#allocation3 + $0x128] sm:$0xf]  ;;  %v1422_v1 = vor.u32 %v1945_v56, %v1421_v54  ;;  %v1426_v2 = vor.u32 %v1943_v57, %v1423_v58 }
  0x32   :  { %561 = vmatpush.bf16.msrb.mxu3 %v1618_v19  ;;  %533 = vmatpush.bf16.msrb.mxu1 %v1614_v23  ;;  %v1977_v63 = vld [vmem:[#allocation3 + $0x134] sm:$0xf0]  ;;  %v1405_v3 = vld [vmem:[#allocation3 + $0x8] sm:$0xf]  ;;  %v1554_v4 = vor.u32 %v1975_v60, %v1551_v61  ;;  %v1939_v6 = vld [vmem:[#allocation3 + $0xc] sm:$0xf] }
  0x33   :  { %v1941_v5 = vld [vmem:[#allocation3 + $0x14] sm:$0xf0]  ;;  %v1407_v7 = vld [vmem:[#allocation3 + $0x18] sm:$0xf0]  ;;  %v1550_v8 = vor.u32 %v1977_v63, %v1549_v62  ;;  %v1971_v9 = vld [vmem:[#allocation3 + $0x10c] sm:$0xf] }
  0x34   :  { %520 = vmatpush.bf16.msrb.mxu0 %v1470_v28  ;;  %v1535_v10 = vld [vmem:[#allocation3 + $0x118] sm:$0xf0]  ;;  %v1533_v11 = vld [vmem:[#allocation3 + $0x108] sm:$0xf]  ;;  %v1973_v12 = vld [vmem:[#allocation3 + $0x114] sm:$0xf0]  ;;  %v1406_v13 = vor.u32 %v1941_v5, %v1405_v3  ;;  %v1410_v14 = vor.u32 %v1939_v6, %v1407_v7 }
  0x35   :  { %548 = vmatpush.bf16.msrb.mxu2 %v1474_v29  ;;  %v1538_v16 = vor.u32 %v1971_v9, %v1535_v10  ;;  %v1534_v17 = vor.u32 %v1973_v12, %v1533_v11  ;;  %v2235_v18 = vld [vmem:[%s2485_s4] sm:$0xf]  ;;  %v1912_v27 = vld [vmem:[#allocation3 + $0x3f0] sm:$0xf0]  ;;  %v2060_v33 = vld [vmem:[#allocation3 + $0x3c4] sm:$0xf] }
  0x36   :  { %562 = vmatpush.bf16.msrb.mxu3 %v1602_v31  ;;  %534 = vmatpush.bf16.msrb.mxu1 %v1598_v35  ;;  %v123_v19 = vperm.slane %v2235_v18, 0  ;;  %v124_v22 = vperm.slane %v2235_v18, 1  ;;  %v1896_v34 = vld [vmem:[#allocation3 + $0x3d0] sm:$0xf0]  ;;  %v1782_v38 = vld [vmem:[#allocation3 + $0x2e0] sm:$0xf] }
  0x37   :  { %v1899_v35 = vor.u32 %v2060_v33, %v1896_v34  ;;  %v2034_v39 = vld [vmem:[#allocation3 + $0x2ec] sm:$0xf0]  ;;  %v1784_v44 = vld [vmem:[#allocation3 + $0x2f0] sm:$0xf0]  ;;  %v2056_v49 = vld [vmem:[#allocation3 + $0x3a4] sm:$0xf] }
  0x38   :  { %521 = vmatpush.bf16.msrb.mxu0 %v1454_v40  ;;  %v1783_v42 = vor.u32 %v2034_v39, %v1782_v38  ;;  %v2066_v48 = vld [vmem:[#allocation3 + $0x3ec] sm:$0xf0]  ;;  %v1766_v56 = vld [vmem:[#allocation3 + $0x2c0] sm:$0xf]  ;;  %v2028_v60 = vld [vmem:[#allocation3 + $0x2c4] sm:$0xf] }
  0x39   :  { %549 = vmatpush.bf16.msrb.mxu2 %v1458_v41  ;;  %v2030_v57 = vld [vmem:[#allocation3 + $0x2cc] sm:$0xf0]  ;;  %v1768_v61 = vld [vmem:[#allocation3 + $0x2d0] sm:$0xf0]  ;;  %v1894_v63 = vld [vmem:[#allocation3 + $0x3c0] sm:$0xf] }
  0x3a   :  { %563 = vmatpush.bf16.msrb.mxu3 %v1586_v43  ;;  %535 = vmatpush.bf16.msrb.mxu1 %v1582_v47  ;;  %v2032_v43 = vld [vmem:[#allocation3 + $0x2e4] sm:$0xf]  ;;  %v1910_v47 = vld [vmem:[#allocation3 + $0x3e0] sm:$0xf]  ;;  %v1864_v5 = vld [vmem:[#allocation3 + $0x390] sm:$0xf0] }
  0x3b   :  { %v1787_v46 = vor.u32 %v2032_v43, %v1784_v44  ;;  %v1750_v10 = vld [vmem:[#allocation3 + $0x2a0] sm:$0xf]  ;;  %v2022_v33 = vld [vmem:[#allocation3 + $0x28c] sm:$0xf0]  ;;  %v2020_v34 = vld [vmem:[#allocation3 + $0x284] sm:$0xf] }
  0x3c   :  { %522 = vmatpush.bf16.msrb.mxu0 %v1438_v52  ;;  %v1911_v52 = vor.u32 %v2066_v48, %v1910_v47  ;;  %v1736_v38 = vld [vmem:[#allocation3 + $0x290] sm:$0xf0]  ;;  %v1862_v43 = vld [vmem:[#allocation3 + $0x380] sm:$0xf]  ;;  %v2054_v44 = vld [vmem:[#allocation3 + $0x38c] sm:$0xf0] }
  0x3d   :  { %550 = vmatpush.bf16.msrb.mxu2 %v1442_v53  ;;  %v1880_v53 = vld [vmem:[#allocation3 + $0x3b0] sm:$0xf0] }
  0x3e   :  { %564 = vmatpush.bf16.msrb.mxu3 %v1570_v55  ;;  %536 = vmatpush.bf16.msrb.mxu1 %v1566_v59  ;;  %v1883_v55 = vor.u32 %v2056_v49, %v1880_v53  ;;  %v1767_v59 = vor.u32 %v2030_v57, %v1766_v56  ;;  %v1863_v49 = vor.u32 %v2054_v44, %v1862_v43 }
  0x40   :  { %523 = vmatpush.bf16.msrb.mxu0 %v1422_v1  ;;  %v2062_v1 = vld [vmem:[#allocation3 + $0x3cc] sm:$0xf0] }
  0x41   :  { %551 = vmatpush.bf16.msrb.mxu2 %v1426_v2  ;;  %v1771_v2 = vor.u32 %v2028_v60, %v1768_v61  ;;  %v1895_v3 = vor.u32 %v2062_v1, %v1894_v63  ;;  %v2016_v63 = vld [vmem:[#allocation3 + $0x264] sm:$0xf]  ;;  %v1720_v1 = vld [vmem:[#allocation3 + $0x270] sm:$0xf0] }
  0x42   :  { %565 = vmatpush.bf16.msrb.mxu3 %v1554_v4  ;;  %537 = vmatpush.bf16.msrb.mxu1 %v1550_v8  ;;  %v2052_v4 = vld [vmem:[#allocation3 + $0x384] sm:$0xf] }
  0x43   :  { %v1867_v9 = vor.u32 %v2052_v4, %v1864_v5  ;;  %v2042_v5 = vld [vmem:[#allocation3 + $0x32c] sm:$0xf0] }
  0x44   :  { %524 = vmatpush.bf16.msrb.mxu0 %v1406_v13  ;;  %v2026_v13 = vld [vmem:[#allocation3 + $0x2ac] sm:$0xf0] }
  0x45   :  { %552 = vmatpush.bf16.msrb.mxu2 %v1410_v14  ;;  %v2024_v14 = vld [vmem:[#allocation3 + $0x2a4] sm:$0xf] }
  0x46   :  { %566 = vmatpush.bf16.msrb.mxu3 %v1538_v16  ;;  %538 = vmatpush.bf16.msrb.mxu1 %v1534_v17  ;;  %v1751_v16 = vor.u32 %v2026_v13, %v1750_v10  ;;  %v1752_v17 = vld [vmem:[#allocation3 + $0x2b0] sm:$0xf0]  ;;  %v1723_v13 = vor.u32 %v2016_v63, %v1720_v1  ;;  %v1814_v63 = vld [vmem:[#allocation3 + $0x320] sm:$0xf] }
  0x47   :  { %525 = vmatmul.bf16.vlgmr.msrb.gmra.mxu0 %v2220_v0 }
  0x48   :  { %553 = vmatmul.bf16.vlgmr.msrb.gmra.mxu2 %v2220_v0  ;;  %v2064_v0 = vld [vmem:[#allocation3 + $0x3e4] sm:$0xf]  ;;  %1126 = vmatpush.bf16.msra.mxu0 %v1783_v42  ;;  %v1739_v42 = vor.u32 %v2020_v34, %v1736_v38 }
  0x49   :  { %567 = vmatmul.bf16.vlgmr.msrb.gmra.mxu3 %v2224_v15  ;;  %539 = vmatmul.bf16.vlgmr.msrb.gmra.mxu1 %v2224_v15  ;;  %v1915_v29 = vor.u32 %v2064_v0, %v1912_v27  ;;  %v125_v0 = vperm.slane %v2235_v18, 2  ;;  %v1755_v27 = vor.u32 %v2024_v14, %v1752_v17  ;;  %v1816_v14 = vld [vmem:[#allocation3 + $0x330] sm:$0xf0] }
  0x4a   :  { %1154 = vmatpush.bf16.msra.mxu2 %v1787_v46  ;;  %1140 = vmatpush.bf16.msra.mxu1 %v1911_v52 }
  0x4b   :  { %1168 = vmatpush.bf16.msra.mxu3 %v1915_v29  ;;  %v1848_v29 = vld [vmem:[#allocation3 + $0x370] sm:$0xf0] }
  0x4c   :  { %1127 = vmatpush.bf16.msra.mxu0 %v1767_v59  ;;  %v2018_v59 = vld [vmem:[#allocation3 + $0x26c] sm:$0xf0] }
  0x4e   :  { %1155 = vmatpush.bf16.msra.mxu2 %v1771_v2  ;;  %1141 = vmatpush.bf16.msra.mxu1 %v1895_v3  ;;  %v1846_v2 = vld [vmem:[#allocation3 + $0x360] sm:$0xf] }
  0x4f   :  { %1169 = vmatpush.bf16.msra.mxu3 %v1899_v35 }
  0x50   :  { %1128 = vmatpush.bf16.msra.mxu0 %v1751_v16 }
  0x52   :  { %1156 = vmatpush.bf16.msra.mxu2 %v1755_v27  ;;  %v2012_v27 = vld [vmem:[#allocation3 + $0x244] sm:$0xf] }
  0x53   :  { %1170 = vmatpush.bf16.msra.mxu3 %v1883_v55 }
  0x56   :  { %1157 = vmatpush.bf16.msra.mxu2 %v1739_v42 }
  0x57   :  { %1171 = vmatpush.bf16.msra.mxu3 %v1867_v9 }
  0x5a   :  { %1158 = vmatpush.bf16.msra.mxu2 %v1723_v13  ;;  %v1904_v13 = vld [vmem:[#allocation3 + $0x3d8] sm:$0xf0] }
  0xa4   :  { %v470_v20 = vpop.f32.mrf.mxu0 }
  0xa5   :  { %v471_v21 = vadd.f32 %v470_v20, %v123_v19  ;;  %v2058_v20 = vld [vmem:[#allocation3 + $0x3ac] sm:$0xf0] }
  0xa8   :  { %v484_v23 = vpop.f32.mrf.mxu1 }
  0xa9   :  { %v485_v24 = vadd.f32 %v484_v23, %v471_v21 }
  0xab   :  { %v498_v25 = vpop.f32.mrf.mxu2  ;;  %v1651_v28 = vmul.f32 -1.442695, %v485_v24  ;;  %v2048_v24 = vld [vmem:[#allocation3 + $0x364] sm:$0xf] }
  0xac   :  { %v499_v26 = vadd.f32 %v498_v25, %v124_v22  ;;  %v472_v15 = vpop.f32.mrf.mxu0 }
  0xad   :  { %2071 = vpow2.f32 %v1651_v28  ;;  %v473_v31 = vadd.f32 %v472_v15, %v123_v19  ;;  %v1878_v19 = vld [vmem:[#allocation3 + $0x3a0] sm:$0xf] }
  0xae   :  { %v512_v30 = vpop.f32.mrf.mxu3  ;;  %v1879_v28 = vor.u32 %v2058_v20, %v1878_v19  ;;  %v1734_v15 = vld [vmem:[#allocation3 + $0x280] sm:$0xf]  ;;  %v2014_v20 = vld [vmem:[#allocation3 + $0x24c] sm:$0xf0] }
  0xaf   :  { %v513_v32 = vadd.f32 %v512_v30, %v499_v26  ;;  %v1702_v19 = vld [vmem:[#allocation3 + $0x240] sm:$0xf] }
  0xb0   :  { %v486_v37 = vpop.f32.mrf.mxu1  ;;  %1142 = vmatpush.bf16.msra.mxu1 %v1879_v28  ;;  %v1704_v28 = vld [vmem:[#allocation3 + $0x250] sm:$0xf0]  ;;  %v1703_v42 = vor.u32 %v2014_v20, %v1702_v19  ;;  %v1815_v19 = vor.u32 %v2042_v5, %v1814_v63  ;;  %v2006_v20 = vld [vmem:[#allocation3 + $0x20c] sm:$0xf0]  ;;  %v1758_v5 = vld [vmem:[#allocation3 + $0x2a8] sm:$0xf] }
  0xb1   :  { %v1653_v36 = vmul.f32 -1.442695, %v513_v32  ;;  %v487_v40 = vadd.f32 %v486_v37, %v473_v31  ;;  %v126_v32 = vperm.slane %v2235_v18, 3  ;;  %v1707_v43 = vor.u32 %v2012_v27, %v1704_v28  ;;  %v2036_v31 = vld [vmem:[#allocation3 + $0x304] sm:$0xf] }
  0xb2   :  { %v1790_v28 = vld [vmem:[#allocation3 + $0x2e8] sm:$0xf] }
  0xb3   :  { %v500_v41 = vpop.f32.mrf.mxu2  ;;  %2073 = vpow2.f32 %v1653_v36  ;;  %v2072_v50 = vpop.eup %2071  ;;  %v1652_v51 = vmul.f32 -1.442695, %v487_v40  ;;  %v1851_v40 = vor.u32 %v2048_v24, %v1848_v29  ;;  %1159 = vmatpush.bf16.msra.mxu2 %v1707_v43  ;;  %v2035_v29 = vld [vmem:[#allocation3 + $0x2f4] sm:$0xf0]  ;;  %v1918_v18 = vld [vmem:[#allocation3 + $0x3e8] sm:$0xf] }
  0xb4   :  { %v501_v45 = vadd.f32 %v500_v41, %v124_v22  ;;  %v2239_v54 = vadd.f32 1.0, %v2072_v50  ;;  %v1735_v41 = vor.u32 %v2022_v33, %v1734_v15  ;;  %v2044_v50 = vld [vmem:[#allocation3 + $0x344] sm:$0xf]  ;;  %1143 = vmatpush.bf16.msra.mxu1 %v1863_v49 }
  0xb5   :  { %2075 = vpow2.f32 %v1652_v51  ;;  %v1832_v51 = vld [vmem:[#allocation3 + $0x350] sm:$0xf0]  ;;  %1172 = vmatpush.bf16.msra.mxu3 %v1851_v40 }
  0xb6   :  { %v514_v58 = vpop.f32.mrf.mxu3  ;;  %2077 = vrcp.f32 %v2239_v54  ;;  %v590_v8 = vand.u32 2147483647, %v2239_v54  ;;  %v592_v12 = vand.u32 2147483648, %v2239_v54  ;;  %vm586_vm0 = vweird.f32 %v2239_v54  ;;  %1129 = vmatpush.bf16.msra.mxu0 %v1735_v41 }
  0xb7   :  { %v515_v62 = vadd.f32 %v514_v58, %v501_v45  ;;  %v1835_v57 = vor.u32 %v2044_v50, %v1832_v51  ;;  %v1718_v58 = vld [vmem:[#allocation3 + $0x260] sm:$0xf] }
  0xb8   :  { %vm2257_vm1 = vcmp.eq.f32.partialorder %v590_v8, 8.507059e+37  ;;  %v2265_v36 = vor.u32 1.1754944e-38, %v592_v12 }
  0xb9   :  { %v2074_v6 = vpop.eup %2073  ;;  %v1654_v7 = vmul.f32 -1.442695, %v515_v62  ;;  %v1719_v62 = vor.u32 %v2018_v59, %v1718_v58  ;;  %1173 = vmatpush.bf16.msra.mxu3 %v1835_v57  ;;  %v1686_v57 = vld [vmem:[#allocation3 + $0x220] sm:$0xf]  ;;  %v2010_v58 = vld [vmem:[#allocation3 + $0x22c] sm:$0xf0] }
  0xba   :  { %v2243_v11 = vadd.f32 1.0, %v2074_v6  ;;  %v2050_v6 = vld [vmem:[#allocation3 + $0x36c] sm:$0xf0] }
  0xbb   :  { %2079 = vpow2.f32 %v1654_v7  ;;  %v2076_v21 = vpop.eup %2075  ;;  %v2040_v7 = vld [vmem:[#allocation3 + $0x324] sm:$0xf]  ;;  %1130 = vmatpush.bf16.msra.mxu0 %v1719_v62  ;;  %v1847_v24 = vor.u32 %v2050_v6, %v1846_v2  ;;  %v1688_v62 = vld [vmem:[#allocation3 + $0x230] sm:$0xf0]  ;;  %v2061_v6 = vld [vmem:[#allocation3 + $0x3cc] sm:$0xf] }
  0xbc   :  { %2081 = vrcp.f32 %v2243_v11  ;;  %v630_v22 = vand.u32 2147483648, %v2243_v11  ;;  %v628_v23 = vand.u32 2147483647, %v2243_v11  ;;  %v2249_v25 = vpop.eup %2077  ;;  %v2251_v26 = vadd.f32 1.0, %v2076_v21 }
  0xbd   :  { %v582_v30 = vmul.f32 %v2249_v25, %v2239_v54  ;;  %vm587_vm2 = vweird.f32 %v2249_v25  ;;  %vm624_vm4 = vweird.f32 %v2243_v11  ;;  %v1819_v38 = vor.u32 %v2040_v7, %v1816_v14  ;;  %1144 = vmatpush.bf16.msra.mxu1 %v1847_v24  ;;  %v1670_v14 = vld [vmem:[#allocation3 + $0x200] sm:$0xf] }
  0xbe   :  { %v2262_v35 = vor.u32 1.1754944e-38, %v630_v22  ;;  %2083 = vrcp.f32 %v2251_v26  ;;  %v605_v37 = vand.u32 2147483647, %v2251_v26  ;;  %vm2269_vm3 = vcmp.eq.f32.partialorder %v628_v23, 8.507059e+37  ;;  %vm2292_vm7 = vmor %vm586_vm0, %vm587_vm2 }
  0xbf   :  { %v583_v39 = vsub.f32 1.0, %v582_v30  ;;  %v607_v48 = vand.u32 2147483648, %v2251_v26  ;;  %vm601_vm5 = vweird.f32 %v2251_v26  ;;  %v689_v30 = vld [vmem:[%s2483_s2] sm:$0xff]  ;;  %1174 = vmatpush.bf16.msra.mxu3 %v1819_v38  ;;  %1131 = vmatpush.bf16.msra.mxu0 %v1703_v42  ;;  %v1792_v38 = vld [vmem:[#allocation3 + $0x2f8] sm:$0xf0]  ;;  %v1791_v42 = vor.u32 %v2035_v29, %v1790_v28 }
  0xc0   :  { %vm2335_vm10 = vcmp.eq.f32.partialorder %v605_v37, 8.507059e+37  ;;  %v2021_v28 = vld [vmem:[#allocation3 + $0x28c] sm:$0xf]  ;;  %v1744_v29 = vld [vmem:[#allocation3 + $0x298] sm:$0xf0] }
  0xc1   :  { %v2080_v45 = vpop.eup %2079  ;;  %v584_v56 = vmul.f32 %v2249_v25, %v583_v39  ;;  %v2304_v54 = vor.u32 1.1754944e-38, %v607_v48  ;;  %v1830_v39 = vld [vmem:[#allocation3 + $0x340] sm:$0xf] }
  0xc2   :  { %v2274_v52 = vpop.eup %2081  ;;  %v2276_v53 = vadd.f32 1.0, %v2080_v45  ;;  %v2065_v45 = vld [vmem:[#allocation3 + $0x3ec] sm:$0xf] }
  0xc3   :  { %v620_v60 = vmul.f32 %v2274_v52, %v2243_v11  ;;  %vm625_vm6 = vweird.f32 %v2274_v52  ;;  %v585_v10 = vadd.f32 %v2249_v25, %v584_v56  ;;  %v2046_v11 = vld [vmem:[#allocation3 + $0x34c] sm:$0xf0]  ;;  %v1920_v56 = vld [vmem:[#allocation3 + $0x3f8] sm:$0xf0] }
  0xc4   :  { %v526_v46 = vpop.f32.mrf.mxu0  ;;  %2085 = vrcp.f32 %v2276_v53  ;;  %v645_v3 = vand.u32 2147483648, %v2276_v53  ;;  %v2296_v8 = vpop.eup %2083  ;;  %v643_v12 = vand.u32 2147483647, %v2276_v53  ;;  %vm2315_vm9 = vmor %vm624_vm4, %vm625_vm6  ;;  %v1831_v44 = vor.u32 %v2046_v11, %v1830_v39  ;;  %v1798_v39 = vld [vmem:[#allocation3 + $0x300] sm:$0xf] }
  0xc5   :  { %v527_v55 = vadd.f32 %v526_v46, %v125_v0  ;;  %v621_v9 = vsub.f32 1.0, %v620_v60  ;;  %v597_v16 = vmul.f32 %v2296_v8, %v2251_v26  ;;  %v589_v22 = vsel %vm2292_vm7, %v2249_v25, %v585_v10  ;;  %v2038_v11 = vld [vmem:[#allocation3 + $0x30c] sm:$0xf0] }
  0xc6   :  { %v540_v61 = vpop.f32.mrf.mxu1  ;;  %v2302_v17 = vor.u32 1.1754944e-38, %v645_v3  ;;  %vm602_vm8 = vweird.f32 %v2296_v8  ;;  %v594_v25 = vsel %vm2257_vm1, %v2265_v36, %v589_v22  ;;  %v1800_v36 = vld [vmem:[#allocation3 + $0x310] sm:$0xf0]  ;;  %v1923_v37 = vor.u32 %v2065_v45, %v1920_v56  ;;  %1145 = vmatpush.bf16.msra.mxu1 %v1831_v44  ;;  %v2057_v44 = vld [vmem:[#allocation3 + $0x3ac] sm:$0xf] }
  0xc7   :  { %v541_v4 = vadd.f32 %v540_v61, %v527_v55  ;;  %v622_v21 = vmul.f32 %v2274_v52, %v621_v9  ;;  %v598_v15 = vsub.f32 1.0, %v597_v16  ;;  %v1803_v55 = vor.u32 %v2036_v31, %v1800_v36  ;;  %v2008_v61 = vld [vmem:[#allocation3 + $0x224] sm:$0xf]  ;;  %vm2353_vm13 = vmor %vm601_vm5, %vm602_vm8  ;;  %v1672_v22 = vld [vmem:[#allocation3 + $0x210] sm:$0xf0] }
  0xc8   :  { %vm639_vm12 = vweird.f32 %v2276_v53  ;;  %v1687_v10 = vor.u32 %v2010_v58, %v1686_v57  ;;  %v1691_v16 = vor.u32 %v2008_v61, %v1688_v62  ;;  %v1799_v45 = vor.u32 %v2038_v11, %v1798_v39  ;;  %v690_v57 = vld [vmem:[%s2483_s2 + $0x8] sm:$0xff]  ;;  %v2029_v58 = vld [vmem:[#allocation3 + $0x2cc] sm:$0xf] }
  0xc9   :  { %2087 = vtanh.f32 %v541_v4  ;;  %v623_v40 = vadd.f32 %v2274_v52, %v622_v21  ;;  %v599_v50 = vmul.f32 %v2296_v8, %v598_v15  ;;  %1175 = vmatpush.bf16.msra.mxu3 %v1803_v55  ;;  %v2004_v21 = vld [vmem:[#allocation3 + $0x204] sm:$0xf]  ;;  %v2033_v15 = vld [vmem:[#allocation3 + $0x2ec] sm:$0xf]  ;;  %v2031_v55 = vld [vmem:[#allocation3 + $0x2d4] sm:$0xf0]  ;;  %v1747_v11 = vor.u32 %v2021_v28, %v1744_v29 }
  0xca   :  { %v2328_v46 = vpop.eup %2085  ;;  %1132 = vmatpush.bf16.msra.mxu0 %v1687_v10  ;;  %1160 = vmatpush.bf16.msra.mxu2 %v1691_v16  ;;  %v1795_v43 = vor.u32 %v2033_v15, %v1792_v38  ;;  %vm644_vm15 = vcmp.eq.f32.partialorder %v643_v12, 8.507059e+37  ;;  %v2063_v62 = vld [vmem:[#allocation3 + $0x3d4] sm:$0xf0]  ;;  %v1664_v10 = vld [vmem:[#allocation2 + $0x8] sm:$0xf0] }
  0xcb   :  { %v554_v23 = vpop.f32.mrf.mxu2  ;;  %v635_v59 = vmul.f32 %v2328_v46, %v2276_v53  ;;  %vm640_vm11 = vweird.f32 %v2328_v46  ;;  %v600_v26 = vadd.f32 %v2296_v8, %v599_v50  ;;  %1146 = vmatpush.bf16.msra.mxu1 %v1815_v19  ;;  %v1774_v50 = vld [vmem:[#allocation3 + $0x2c8] sm:$0xf]  ;;  %v2059_v16 = vld [vmem:[#allocation3 + $0x3b4] sm:$0xf0]  ;;  %v2049_v19 = vld [vmem:[#allocation3 + $0x36c] sm:$0xf] }
  0xcc   :  { %v555_v33 = vadd.f32 %v554_v23, %v126_v32  ;;  %v568_v34 = vpop.f32.mrf.mxu3  ;;  %v528_v41 = vpop.f32.mrf.mxu0  ;;  %vm2359_vm14 = vmor %vm639_vm12, %vm640_vm11  ;;  %v1775_v61 = vor.u32 %v2031_v55, %v1774_v50  ;;  %v2051_v50 = vld [vmem:[#allocation3 + $0x374] sm:$0xf0] }
  0xcd   :  { %v529_v49 = vadd.f32 %v528_v41, %v125_v0  ;;  %v627_v0 = vsel %vm2315_vm9, %v2274_v52, %v623_v40  ;;  %v636_v7 = vsub.f32 1.0, %v635_v59  ;;  %1224 = vmatpush.bf16.msrb.mxu3 %v1923_v37  ;;  %v604_v31 = vsel %vm2353_vm13, %v2296_v8, %v600_v26  ;;  %v1776_v59 = vld [vmem:[#allocation3 + $0x2d8] sm:$0xf0]  ;;  %v2007_v28 = vld [vmem:[#allocation3 + $0x214] sm:$0xf0] }
  0xce   :  { %v569_v48 = vadd.f32 %v568_v34, %v555_v33  ;;  %v542_v60 = vpop.f32.mrf.mxu1  ;;  %v632_v2 = vsel %vm2269_vm3, %v2262_v35, %v627_v0  ;;  %v1671_v33 = vor.u32 %v2006_v20, %v1670_v14  ;;  %v1675_v34 = vor.u32 %v2004_v21, %v1672_v22  ;;  %v1856_v21 = vld [vmem:[#allocation3 + $0x378] sm:$0xf0]  ;;  %v1742_v22 = vld [vmem:[#allocation3 + $0x288] sm:$0xf] }
  0xcf   :  { %v2088_v1 = vpop.eup %2087  ;;  %v543_v4 = vadd.f32 %v542_v60, %v529_v49  ;;  %v691_v35 = vmul.f32 %v689_v30, %v632_v2  ;;  %v637_v23 = vmul.f32 %v2328_v46, %v636_v7  ;;  %v1907_v30 = vor.u32 %v2061_v6, %v1904_v13  ;;  %v1888_v49 = vld [vmem:[#allocation3 + $0x3b8] sm:$0xf0]  ;;  %1147 = vmatpush.bf16.msra.mxu1 %v1799_v45  ;;  %v2053_v2 = vld [vmem:[#allocation3 + $0x38c] sm:$0xf]  ;;  %v2027_v6 = vld [vmem:[#allocation3 + $0x2b4] sm:$0xf0] }
  0xd0   :  { %v1655_v3 = vmul.f32 -1.442695, %v569_v48  ;;  %v693_v47 = vmul.f32 %v2088_v1, %v594_v25  ;;  %1133 = vmatpush.bf16.msra.mxu0 %v1671_v33  ;;  %v1891_v8 = vor.u32 %v2057_v44, %v1888_v49  ;;  %1161 = vmatpush.bf16.msra.mxu2 %v1675_v34  ;;  %v609_v63 = vsel %vm2335_vm10, %v2304_v54, %v604_v31  ;;  %v2025_v7 = vld [vmem:[#allocation3 + $0x2ac] sm:$0xf]  ;;  %v1886_v13 = vld [vmem:[#allocation3 + $0x3a8] sm:$0xf] }
  0xd1   :  { %v638_v40 = vadd.f32 %v2328_v46, %v637_v23  ;;  %1225 = vmatpush.bf16.msrb.mxu3 %v1907_v30  ;;  %v1779_v1 = vor.u32 %v2029_v58, %v1776_v59  ;;  %v1759_v54 = vor.u32 %v2027_v6, %v1758_v5  ;;  %v1887_v20 = vor.u32 %v2059_v16, %v1886_v13  ;;  %v1870_v30 = vld [vmem:[#allocation3 + $0x388] sm:$0xf]  ;;  %v2055_v33 = vld [vmem:[#allocation3 + $0x394] sm:$0xf0]  ;;  %v2045_v34 = vld [vmem:[#allocation3 + $0x34c] sm:$0xf] }
  0xd2   :  { %2089 = vpow2.f32 %v1655_v3  ;;  %v2365_v24 = vadd.f32 %v693_v47, %v691_v35  ;;  %v1872_v3 = vld [vmem:[#allocation3 + $0x398] sm:$0xf0]  ;;  %v2002_v47 = vld [vmem:[#allocation2 + $0x4] sm:$0xf]  ;;  %v1859_v23 = vor.u32 %v2049_v19, %v1856_v21  ;;  %v1854_v49 = vld [vmem:[#allocation3 + $0x368] sm:$0xf] }
  0xd3   :  { %2091 = vtanh.f32 %v543_v4  ;;  %v556_v27 = vpop.f32.mrf.mxu2  ;;  %v642_v56 = vsel %vm2359_vm14, %v2328_v46, %v638_v40  ;;  %v1902_v46 = vld [vmem:[#allocation3 + $0x3c8] sm:$0xf]  ;;  %v1875_v9 = vor.u32 %v2053_v2, %v1872_v3  ;;  %v1760_v35 = vld [vmem:[#allocation3 + $0x2b8] sm:$0xf0]  ;;  %v2394_v26 = vor.u32 %v2002_v47, %v1664_v10  ;;  %v2011_v5 = vld [vmem:[#allocation3 + $0x234] sm:$0xf0] }
  0xd4   :  { %v557_v25 = vadd.f32 %v556_v27, %v126_v32  ;;  %703 = vst [vmem:[%s2487_s6] sm:$0xff] %v2365_v24  ;;  %v570_v41 = vpop.f32.mrf.mxu3  ;;  %v2067_v32 = vld [vmem:[#allocation3 + $0x3f4] sm:$0xf0]  ;;  %v647_v60 = vsel %vm644_vm15, %v2302_v17, %v642_v56  ;;  %1182 = vmatpush.bf16.msrb.mxu0 %v1791_v42  ;;  %1210 = vmatpush.bf16.msrb.mxu2 %v1795_v43  ;;  %v1840_v40 = vld [vmem:[#allocation3 + $0x358] sm:$0xf0]  ;;  %v1726_v43 = vld [vmem:[#allocation3 + $0x268] sm:$0xf] }
  0xd5   :  { %v1919_v48 = vor.u32 %v2067_v32, %v1918_v18  ;;  %v692_v4 = vmul.f32 %v690_v57, %v647_v60  ;;  %v1903_v52 = vor.u32 %v2063_v62, %v1902_v46  ;;  %1226 = vmatpush.bf16.msrb.mxu3 %v1891_v8  ;;  %v1763_v14 = vor.u32 %v2025_v7, %v1760_v35  ;;  %v2023_v27 = vld [vmem:[#allocation3 + $0x294] sm:$0xf0]  ;;  %v2017_v32 = vld [vmem:[#allocation3 + $0x26c] sm:$0xf]  ;;  %v1824_v8 = vld [vmem:[#allocation3 + $0x338] sm:$0xf0] }
  0xd6   :  { %v571_v36 = vadd.f32 %v570_v41, %v557_v25  ;;  %1148 = vmatmul.bf16.vlgmr.msra.gmra.mxu1 %v2394_v26  ;;  %1176 = vmatmul.bf16.vlgmr.msra.gmra.mxu3 %v2394_v26  ;;  %v1743_v25 = vor.u32 %v2023_v27, %v1742_v22  ;;  %v1871_v42 = vor.u32 %v2055_v33, %v1870_v30  ;;  %v2019_v18 = vld [vmem:[#allocation3 + $0x274] sm:$0xf0]  ;;  %v2041_v57 = vld [vmem:[#allocation3 + $0x32c] sm:$0xf]  ;;  %v1712_v46 = vld [vmem:[#allocation3 + $0x258] sm:$0xf0] }
  0xd7   :  { %1196 = vmatpush.bf16.msrb.mxu1 %v1919_v48  ;;  %v1843_v31 = vor.u32 %v2045_v34, %v1840_v40  ;;  %v1727_v48 = vor.u32 %v2019_v18, %v1726_v43  ;;  %v1855_v59 = vor.u32 %v2051_v50, %v1854_v49  ;;  %v2015_v60 = vld [vmem:[#allocation3 + $0x254] sm:$0xf0]  ;;  %v1838_v62 = vld [vmem:[#allocation3 + $0x348] sm:$0xf]  ;;  %v1808_v2 = vld [vmem:[#allocation3 + $0x318] sm:$0xf0] }
  0xd8   :  { %v2090_v0 = vpop.eup %2089  ;;  %v1656_v37 = vmul.f32 -1.442695, %v571_v36  ;;  %1183 = vmatpush.bf16.msrb.mxu0 %v1775_v61  ;;  %1211 = vmatpush.bf16.msrb.mxu2 %v1779_v1  ;;  %v1728_v36 = vld [vmem:[#allocation3 + $0x278] sm:$0xf0]  ;;  %v1827_v61 = vor.u32 %v2041_v57, %v1824_v8  ;;  %v2037_v1 = vld [vmem:[#allocation3 + $0x30c] sm:$0xf] }
  0xd9   :  { %v2092_v53 = vpop.eup %2091  ;;  %v2386_v12 = vadd.f32 1.0, %v2090_v0  ;;  %1227 = vmatpush.bf16.msrb.mxu3 %v1875_v9  ;;  %v1731_v56 = vor.u32 %v2017_v32, %v1728_v36  ;;  %v1710_v0 = vld [vmem:[#allocation3 + $0x248] sm:$0xf]  ;;  %v2009_v35 = vld [vmem:[#allocation3 + $0x22c] sm:$0xf]  ;;  %v1811_v10 = vor.u32 %v2037_v1, %v1808_v2 }
  0xda   :  { %v694_v17 = vmul.f32 %v2092_v53, %v609_v63  ;;  %2093 = vpow2.f32 %v1656_v37  ;;  %v2013_v37 = vld [vmem:[#allocation3 + $0x24c] sm:$0xf]  ;;  %v2047_v53 = vld [vmem:[#allocation3 + $0x354] sm:$0xf0]  ;;  %v1822_v13 = vld [vmem:[#allocation3 + $0x328] sm:$0xf] }
  0xdb   :  { %2095 = vrcp.f32 %v2386_v12  ;;  %1197 = vmatpush.bf16.msrb.mxu1 %v1903_v52  ;;  %v668_v44 = vand.u32 2147483647, %v2386_v12  ;;  %v670_v55 = vand.u32 2147483648, %v2386_v12  ;;  %vm664_vm1 = vweird.f32 %v2386_v12  ;;  %v1694_v52 = vld [vmem:[#allocation3 + $0x228] sm:$0xf] }
  0xdc   :  { %v2392_v51 = vadd.f32 %v694_v17, %v692_v4  ;;  %1184 = vmatpush.bf16.msrb.mxu0 %v1759_v54  ;;  %1212 = vmatpush.bf16.msrb.mxu2 %v1763_v14  ;;  %v1715_v17 = vor.u32 %v2013_v37, %v1712_v46  ;;  %v1839_v9 = vor.u32 %v2047_v53, %v1838_v62  ;;  %v2043_v14 = vld [vmem:[#allocation3 + $0x334] sm:$0xf0]  ;;  %v1678_v27 = vld [vmem:[#allocation3 + $0x208] sm:$0xf]  ;;  %v2005_v30 = vld [vmem:[#allocation3 + $0x20c] sm:$0xf] }
  0xdd   :  { %1228 = vmatpush.bf16.msrb.mxu3 %v1859_v23  ;;  %v671_v4 = vor.u32 1.1754944e-38, %v670_v55  ;;  %vm669_vm3 = vcmp.eq.f32.partialorder %v668_v44, 8.507059e+37  ;;  %v1695_v21 = vor.u32 %v2011_v5, %v1694_v52  ;;  %v1680_v33 = vld [vmem:[#allocation3 + $0x218] sm:$0xf0]  ;;  %v1806_v34 = vld [vmem:[#allocation3 + $0x308] sm:$0xf] }
  0xde   :  { %704 = vst [vmem:[%s2487_s6 + $0x8] sm:$0xff] %v2392_v51 }
  0xdf   :  { %1198 = vmatpush.bf16.msrb.mxu1 %v1887_v20 }
  0xe0   :  { %v2094_v15 = vpop.eup %2093  ;;  %1185 = vmatpush.bf16.msrb.mxu0 %v1743_v25  ;;  %1213 = vmatpush.bf16.msrb.mxu2 %v1747_v11  ;;  %v1823_v25 = vor.u32 %v2043_v14, %v1822_v13  ;;  %v1679_v11 = vor.u32 %v2007_v28, %v1678_v27 }
  0xe1   :  { %v2096_v38 = vpop.eup %2095  ;;  %v2402_v39 = vadd.f32 1.0, %v2094_v15  ;;  %1229 = vmatpush.bf16.msrb.mxu3 %v1843_v31 }
  0xe2   :  { %v660_v41 = vmul.f32 %v2096_v38, %v2386_v12  ;;  %vm665_vm0 = vweird.f32 %v2096_v38  ;;  %v1696_v12 = vld [vmem:[#allocation3 + $0x238] sm:$0xf0] }
  0xe3   :  { %2097 = vrcp.f32 %v2402_v39  ;;  %1199 = vmatpush.bf16.msrb.mxu1 %v1871_v42  ;;  %vm666_vm2 = vmor %vm664_vm1, %vm665_vm0  ;;  %v683_v20 = vand.u32 2147483647, %v2402_v39  ;;  %v685_v22 = vand.u32 2147483648, %v2402_v39  ;;  %v1699_v23 = vor.u32 %v2009_v35, %v1696_v12 }
  0xe4   :  { %v661_v45 = vsub.f32 1.0, %v660_v41  ;;  %2099 = vtanh.f32 %v2365_v24  ;;  %1186 = vmatpush.bf16.msrb.mxu0 %v1727_v48  ;;  %v1711_v24 = vor.u32 %v2015_v60, %v1710_v0  ;;  %1214 = vmatpush.bf16.msrb.mxu2 %v1731_v56  ;;  %vm679_vm5 = vweird.f32 %v2402_v39  ;;  %v2427_v48 = vld [vmem:[%s2485_s4 + $0x4] sm:$0xf] }
  0xe5   :  { %1230 = vmatpush.bf16.msrb.mxu3 %v1827_v61  ;;  %2101 = vtanh.f32 %v2392_v51  ;;  %v2039_v51 = vld [vmem:[#allocation3 + $0x314] sm:$0xf0]  ;;  %v686_v40 = vor.u32 1.1754944e-38, %v685_v22  ;;  %v1683_v41 = vor.u32 %v2005_v30, %v1680_v33  ;;  %vm684_vm7 = vcmp.eq.f32.partialorder %v683_v20, 8.507059e+37 }
  0xe6   :  { %v662_v58 = vmul.f32 %v2096_v38, %v661_v45  ;;  %v1807_v43 = vor.u32 %v2039_v51, %v1806_v34  ;;  %v788_v49 = vperm.slane %v2427_v48, 0  ;;  %v791_v35 = vperm.slane %v2427_v48, 3 }
  0xe7   :  { %1200 = vmatpush.bf16.msrb.mxu1 %v1855_v59 }
  0xe8   :  { %v663_v63 = vadd.f32 %v2096_v38, %v662_v58  ;;  %1187 = vmatpush.bf16.msrb.mxu0 %v1711_v24  ;;  %1215 = vmatpush.bf16.msrb.mxu2 %v1715_v17 }
  0xe9   :  { %v2098_v3 = vpop.eup %2097  ;;  %1231 = vmatpush.bf16.msrb.mxu3 %v1811_v10 }
  0xea   :  { %v667_v6 = vsel %vm666_vm2, %v2096_v38, %v663_v63  ;;  %v675_v7 = vmul.f32 %v2098_v3, %v2402_v39  ;;  %v2100_v54 = vpop.eup %2099  ;;  %vm680_vm4 = vweird.f32 %v2098_v3 }
  0xeb   :  { %v672_v47 = vsel %vm669_vm3, %v671_v4, %v667_v6  ;;  %1201 = vmatpush.bf16.msrb.mxu1 %v1839_v9  ;;  %vm681_vm6 = vmor %vm679_vm5, %vm680_vm4  ;;  %v2102_v18 = vpop.eup %2101  ;;  %v790_v9 = vperm.slane %v2427_v48, 2 }
  0xec   :  { %v699_v16 = vmul.f32 %v2100_v54, %v672_v47  ;;  %v676_v19 = vsub.f32 1.0, %v675_v7  ;;  %1188 = vmatpush.bf16.msrb.mxu0 %v1695_v21  ;;  %1216 = vmatpush.bf16.msrb.mxu2 %v1699_v23 }
  0xed   :  { %1232 = vmatmul.bf16.vlgmr.msrb.gmra.mxu3 %v2394_v26 }
  0xee   :  { %701 = vst [vmem:[%s2486_s5] sm:$0xff] %v699_v16  ;;  %v705_v29 = vpack.c.bf16 %v699_v16, %v699_v16  ;;  %v677_v15 = vmul.f32 %v2098_v3, %v676_v19 }
  0xef   :  { %1202 = vmatpush.bf16.msrb.mxu1 %v1823_v25 }
  0xf0   :  { %707 = vst [vmem:[#allocation2] sm:$0xf] %v705_v29  ;;  %v678_v38 = vadd.f32 %v2098_v3, %v677_v15  ;;  %1189 = vmatpush.bf16.msrb.mxu0 %v1679_v11  ;;  %1217 = vmatpush.bf16.msrb.mxu2 %v1683_v41 }
  0xf2   :  { %v682_v42 = vsel %vm681_vm6, %v2098_v3, %v678_v38 }
  0xf3   :  { %v687_v32 = vsel %vm684_vm7, %v686_v40, %v682_v42  ;;  %1203 = vmatpush.bf16.msrb.mxu1 %v1807_v43 }
  0xf4   :  { %v700_v44 = vmul.f32 %v2102_v18, %v687_v32 }
  0xf6   :  { %702 = vst [vmem:[%s2486_s5 + $0x8] sm:$0xff] %v700_v44  ;;  %v706_v39 = vpack.c.bf16 %v700_v44, %v700_v44  ;;  %1204 = vmatmul.bf16.vlgmr.msrb.gmra.mxu1 %v2394_v26  ;;  %v789_v26 = vperm.slane %v2427_v48, 1 }
  0xf7   :  { %v1662_v31 = vld [vmem:[#allocation2] sm:$0xf] }
  0xf8   :  { %708 = vst [vmem:[#allocation2 + $0x8] sm:$0xf] %v706_v39 }
  0xff   :  { %v2003_v36 = vld [vmem:[#allocation2 + $0x4] sm:$0xf0] }
 0x100   :  { %v1663_v45 = vor.u32 %v2003_v36, %v1662_v31 }
 0x102   :  { %1134 = vmatmul.bf16.vlgmr.msra.gmra.mxu0 %v1663_v45  ;;  %1162 = vmatmul.bf16.vlgmr.msra.gmra.mxu2 %v1663_v45 }
 0x112   :  { %1190 = vmatmul.bf16.vlgmr.msrb.gmra.mxu0 %v1663_v45  ;;  %1218 = vmatmul.bf16.vlgmr.msrb.gmra.mxu2 %v1663_v45 }
 0x153   :  { %v1149_v50 = vpop.f32.mrf.mxu1 }
 0x159   :  { %v1177_v8 = vpop.f32.mrf.mxu3 }
 0x15b   :  { %v1151_v37 = vpop.f32.mrf.mxu1 }
 0x161   :  { %v1179_v2 = vpop.f32.mrf.mxu3 }
 0x170   :  { %v1233_v19 = vpop.f32.mrf.mxu3 }
 0x173   :  { %v1205_v10 = vpop.f32.mrf.mxu1 }
 0x17b   :  { %v1207_v39 = vpop.f32.mrf.mxu1 }
 0x17f   :  { %v1135_v55 = vpop.f32.mrf.mxu0 }
 0x180   :  { %v1136_v56 = vadd.f32 %v1135_v55, %v788_v49  ;;  %v1235_v55 = vpop.f32.mrf.mxu3 }
 0x182   :  { %v1150_v57 = vadd.f32 %v1149_v50, %v1136_v56 }
 0x184   :  { %v1924_v58 = vmul.f32 -1.442695, %v1150_v57 }
 0x185   :  { %v1163_v59 = vpop.f32.mrf.mxu2 }
 0x186   :  { %2103 = vpow2.f32 %v1924_v58  ;;  %v1164_v0 = vadd.f32 %v1163_v59, %v789_v26 }
 0x187   :  { %v1137_v60 = vpop.f32.mrf.mxu0 }
 0x188   :  { %v1178_v61 = vadd.f32 %v1177_v8, %v1164_v0  ;;  %v1138_v46 = vadd.f32 %v1137_v60, %v788_v49  ;;  %v1930_v0 = vld [vmem:[%s2483_s2 + $0x10] sm:$0xff] }
 0x18a   :  { %v1926_v62 = vmul.f32 -1.442695, %v1178_v61  ;;  %v1152_v53 = vadd.f32 %v1151_v37, %v1138_v46 }
 0x18c   :  { %v2104_v63 = vpop.eup %2103  ;;  %2105 = vpow2.f32 %v1926_v62  ;;  %v1925_v24 = vmul.f32 -1.442695, %v1152_v53 }
 0x18d   :  { %v1244_v1 = vadd.f32 1.0, %v2104_v63  ;;  %v1165_v3 = vpop.f32.mrf.mxu2 }
 0x18e   :  { %2107 = vpow2.f32 %v1925_v24  ;;  %v1166_v4 = vadd.f32 %v1165_v3, %v789_v26 }
 0x18f   :  { %2109 = vrcp.f32 %v1244_v1  ;;  %v1191_v52 = vpop.f32.mrf.mxu0  ;;  %vm1251_vm8 = vweird.f32 %v1244_v1  ;;  %v1255_v11 = vand.u32 2147483647, %v1244_v1  ;;  %v1257_v40 = vand.u32 2147483648, %v1244_v1 }
 0x190   :  { %v1180_v17 = vadd.f32 %v1179_v2, %v1166_v4  ;;  %v1192_v16 = vadd.f32 %v1191_v52, %v790_v9 }
 0x191   :  { %vm1256_vm13 = vcmp.eq.f32.partialorder %v1255_v11, 8.507059e+37  ;;  %v1258_v49 = vor.u32 1.1754944e-38, %v1257_v40 }
 0x192   :  { %v2106_v5 = vpop.eup %2105  ;;  %v1927_v6 = vmul.f32 -1.442695, %v1180_v17  ;;  %v1206_v15 = vadd.f32 %v1205_v10, %v1192_v16  ;;  %v1931_v10 = vld [vmem:[%s2483_s2 + $0x18] sm:$0xff] }
 0x193   :  { %v1282_v7 = vadd.f32 1.0, %v2106_v5 }
 0x194   :  { %v2108_v12 = vpop.eup %2107  ;;  %2111 = vpow2.f32 %v1927_v6 }
 0x195   :  { %v2110_v54 = vpop.eup %2109  ;;  %2113 = vrcp.f32 %v1282_v7  ;;  %v2433_v47 = vadd.f32 1.0, %v2108_v12  ;;  %v1219_v13 = vpop.f32.mrf.mxu2  ;;  %v1295_v38 = vand.u32 2147483648, %v1282_v7  ;;  %v1293_v44 = vand.u32 2147483647, %v1282_v7 }
 0x196   :  { %v1247_v14 = vmul.f32 %v2110_v54, %v1244_v1  ;;  %v1220_v20 = vadd.f32 %v1219_v13, %v791_v35  ;;  %vm1252_vm9 = vweird.f32 %v2110_v54  ;;  %vm1289_vm12 = vweird.f32 %v1282_v7 }
 0x197   :  { %2115 = vrcp.f32 %v2433_v47  ;;  %v1193_v30 = vpop.f32.mrf.mxu0  ;;  %vm2443_vm10 = vmor %vm1251_vm8, %vm1252_vm9  ;;  %v1296_v50 = vor.u32 1.1754944e-38, %v1295_v38  ;;  %vm1294_vm15 = vcmp.eq.f32.partialorder %v1293_v44, 8.507059e+37  ;;  %vm1266_vm0 = vweird.f32 %v2433_v47 }
 0x198   :  { %v1248_v21 = vsub.f32 1.0, %v1247_v14  ;;  %v1234_v22 = vadd.f32 %v1233_v19, %v1220_v20  ;;  %v1194_v18 = vadd.f32 %v1193_v30, %v790_v9  ;;  %v1270_v60 = vand.u32 2147483647, %v2433_v47 }
 0x199   :  { %v1272_v1 = vand.u32 2147483648, %v2433_v47 }
 0x19a   :  { %v2112_v23 = vpop.eup %2111  ;;  %v1249_v27 = vmul.f32 %v2110_v54, %v1248_v21  ;;  %v1928_v25 = vmul.f32 -1.442695, %v1234_v22  ;;  %v1208_v57 = vadd.f32 %v1207_v39, %v1194_v18  ;;  %vm1271_vm5 = vcmp.eq.f32.partialorder %v1270_v60, 8.507059e+37 }
 0x19b   :  { %v2114_v28 = vpop.eup %2113  ;;  %v2436_v29 = vadd.f32 1.0, %v2112_v23 }
 0x19c   :  { %v1285_v33 = vmul.f32 %v2114_v28, %v1282_v7  ;;  %v1250_v34 = vadd.f32 %v2110_v54, %v1249_v27  ;;  %vm1290_vm11 = vweird.f32 %v2114_v28 }
 0x19d   :  { %v2438_v51 = vpop.eup %2115  ;;  %2117 = vrcp.f32 %v2436_v29  ;;  %v1221_v41 = vpop.f32.mrf.mxu2  ;;  %vm1291_vm14 = vmor %vm1289_vm12, %vm1290_vm11  ;;  %v1310_v52 = vand.u32 2147483648, %v2436_v29  ;;  %v1308_v5 = vand.u32 2147483647, %v2436_v29  ;;  %vm1304_vm4 = vweird.f32 %v2436_v29 }
 0x19e   :  { %v1286_v42 = vsub.f32 1.0, %v1285_v33  ;;  %v1262_v43 = vmul.f32 %v2438_v51, %v2433_v47  ;;  %2119 = vpow2.f32 %v1928_v25  ;;  %v1254_v45 = vsel %vm2443_vm10, %v2110_v54, %v1250_v34 }
 0x19f   :  { %2121 = vtanh.f32 %v1206_v15  ;;  %v1222_v48 = vadd.f32 %v1221_v41, %v791_v35  ;;  %v1259_v59 = vsel %vm1256_vm13, %v1258_v49, %v1254_v45  ;;  %vm1267_vm1 = vweird.f32 %v2438_v51 }
 0x1a0   :  { %v1287_v31 = vmul.f32 %v2114_v28, %v1286_v42  ;;  %v1263_v36 = vsub.f32 1.0, %v1262_v43  ;;  %2123 = vtanh.f32 %v1208_v57  ;;  %vm1268_vm2 = vmor %vm1266_vm0, %vm1267_vm1  ;;  %v1273_v35 = vor.u32 1.1754944e-38, %v1272_v1 }
 0x1a1   :  { %v1236_v8 = vadd.f32 %v1235_v55, %v1222_v48  ;;  %v1311_v47 = vor.u32 1.1754944e-38, %v1310_v52  ;;  %vm1309_vm7 = vcmp.eq.f32.partialorder %v1308_v5, 8.507059e+37 }
 0x1a2   :  { %v1288_v56 = vadd.f32 %v2114_v28, %v1287_v31  ;;  %v1264_v26 = vmul.f32 %v2438_v51, %v1263_v36 }
 0x1a3   :  { %v2118_v58 = vpop.eup %2117  ;;  %v1929_v2 = vmul.f32 -1.442695, %v1236_v8 }
 0x1a4   :  { %v2120_v37 = vpop.eup %2119  ;;  %v1300_v61 = vmul.f32 %v2118_v58, %v2436_v29  ;;  %v1292_v46 = vsel %vm1291_vm14, %v2114_v28, %v1288_v56  ;;  %v1265_v62 = vadd.f32 %v2438_v51, %v1264_v26  ;;  %vm1305_vm3 = vweird.f32 %v2118_v58 }
 0x1a5   :  { %v2122_v53 = vpop.eup %2121  ;;  %v1297_v63 = vsel %vm1294_vm15, %v1296_v50, %v1292_v46  ;;  %v1322_v24 = vadd.f32 1.0, %v2120_v37  ;;  %vm1306_vm6 = vmor %vm1304_vm4, %vm1305_vm3 }
 0x1a6   :  { %v1301_v3 = vsub.f32 1.0, %v1300_v61  ;;  %v1357_v4 = vmul.f32 %v1930_v0, %v1297_v63  ;;  %v1359_v17 = vmul.f32 %v2122_v53, %v1259_v59  ;;  %v1269_v9 = vsel %vm1268_vm2, %v2438_v51, %v1265_v62  ;;  %v2124_v13 = vpop.eup %2123 }
 0x1a7   :  { %2125 = vrcp.f32 %v1322_v24  ;;  %v1274_v54 = vsel %vm1271_vm5, %v1273_v35, %v1269_v9  ;;  %v1335_v15 = vand.u32 2147483648, %v1322_v24  ;;  %v1333_v30 = vand.u32 2147483647, %v1322_v24 }
 0x1a8   :  { %v1302_v6 = vmul.f32 %v2118_v58, %v1301_v3  ;;  %v1361_v7 = vadd.f32 %v1359_v17, %v1357_v4  ;;  %2127 = vpow2.f32 %v1929_v2  ;;  %v1360_v23 = vmul.f32 %v2124_v13, %v1274_v54 }
 0x1a9   :  { %vm1329_vm9 = vweird.f32 %v1322_v24  ;;  %v1336_v34 = vor.u32 1.1754944e-38, %v1335_v15  ;;  %vm1334_vm11 = vcmp.eq.f32.partialorder %v1333_v30, 8.507059e+37 }
 0x1aa   :  { %1934 = vst [vmem:[%s2487_s6 + $0x10] sm:$0xff] %v1361_v7  ;;  %v1303_v12 = vadd.f32 %v2118_v58, %v1302_v6  ;;  %2129 = vtanh.f32 %v1361_v7 }
 0x1ac   :  { %v1307_v14 = vsel %vm1306_vm6, %v2118_v58, %v1303_v12 }
 0x1ad   :  { %v2126_v16 = vpop.eup %2125  ;;  %v1312_v19 = vsel %vm1309_vm7, %v1311_v47, %v1307_v14 }
 0x1ae   :  { %v2128_v20 = vpop.eup %2127  ;;  %v1325_v21 = vmul.f32 %v2126_v16, %v1322_v24  ;;  %v1358_v22 = vmul.f32 %v1931_v10, %v1312_v19  ;;  %vm1330_vm8 = vweird.f32 %v2126_v16 }
 0x1af   :  { %v1323_v27 = vadd.f32 1.0, %v2128_v20  ;;  %vm1331_vm10 = vmor %vm1329_vm9, %vm1330_vm8 }
 0x1b0   :  { %v1326_v28 = vsub.f32 1.0, %v1325_v21  ;;  %v1362_v29 = vadd.f32 %v1360_v23, %v1358_v22  ;;  %v2130_v51 = vpop.eup %2129 }
 0x1b1   :  { %2131 = vrcp.f32 %v1323_v27  ;;  %v1350_v32 = vand.u32 2147483648, %v1323_v27  ;;  %v1348_v39 = vand.u32 2147483647, %v1323_v27  ;;  %vm1344_vm13 = vweird.f32 %v1323_v27 }
 0x1b2   :  { %v1327_v25 = vmul.f32 %v2126_v16, %v1326_v28  ;;  %1935 = vst [vmem:[%s2487_s6 + $0x18] sm:$0xff] %v1362_v29  ;;  %2133 = vtanh.f32 %v1362_v29 }
 0x1b3   :  { %v1351_v36 = vor.u32 1.1754944e-38, %v1350_v32  ;;  %vm1349_vm15 = vcmp.eq.f32.partialorder %v1348_v39, 8.507059e+37 }
 0x1b4   :  { %v1328_v33 = vadd.f32 %v2126_v16, %v1327_v25 }
 0x1b6   :  { %v1332_v38 = vsel %vm1331_vm10, %v2126_v16, %v1328_v33 }
 0x1b7   :  { %v2132_v11 = vpop.eup %2131  ;;  %v1337_v40 = vsel %vm1334_vm11, %v1336_v34, %v1332_v38 }
 0x1b8   :  { %v1365_v41 = vmul.f32 %v2130_v51, %v1337_v40  ;;  %v1340_v42 = vmul.f32 %v2132_v11, %v1323_v27  ;;  %vm1345_vm12 = vweird.f32 %v2132_v11  ;;  %v2134_v48 = vpop.eup %2133 }
 0x1b9   :  { %vm1346_vm14 = vmor %vm1344_vm13, %vm1345_vm12 }
 0x1ba   :  { %1932 = vst [vmem:[%s2486_s5 + $0x10] sm:$0xff] %v1365_v41  ;;  %v1373_v43 = vpack.c.bf16 %v1365_v41, %v1365_v41  ;;  %v1341_v18 = vsub.f32 1.0, %v1340_v42 }
 0x1bc   :  { %1375 = vst [vmem:[#allocation2] sm:$0xf] %v1373_v43  ;;  %v1342_v44 = vmul.f32 %v2132_v11, %v1341_v18 }
 0x1be   :  { %v1343_v31 = vadd.f32 %v2132_v11, %v1342_v44 }
 0x1c0   :  { %v1347_v45 = vsel %vm1346_vm14, %v2132_v11, %v1343_v31 }
 0x1c1   :  { %v1352_v49 = vsel %vm1349_vm15, %v1351_v36, %v1347_v45 }
 0x1c2   :  { %v1366_v50 = vmul.f32 %v2134_v48, %v1352_v49 }
 0x1c4   :  { %1933 = vst [vmem:[%s2486_s5 + $0x18] sm:$0xff] %v1366_v50  ;;  %v1374_v55 = vpack.c.bf16 %v1366_v50, %v1366_v50 }
 0x1c6   :  { %1376 = vst [vmem:[#allocation2 + $0x8] sm:$0xf] %v1374_v55 }
 0x1c7   :  { %1385 = vsyncpa [#allocation4], 1 }

</bundles_post_ra>
